<compile_context>
chip_gen: v7x
topology: tpu7x:2x2x1
jax: 0.10.0
libtpu: 0.0.40
codegen_flags: <defaults>
</compile_context>

<pallas_src>
import math
import jax
import jax.numpy as jnp
from jax.experimental import pallas as pl
from jax.experimental.pallas import tpu as pltpu

# ----------------------------- config ---------------------------------------
BATCH = 2
SEQ = 8
TOKENS = BATCH * SEQ
HIDDEN = 32            # stands for 768
NUM_HEADS = 4
HEAD_DIM = HIDDEN // NUM_HEADS
FFN = 64               # stands for 3072
NUM_LAYERS = 2         # stands for 12
NUM_CLASSES = 3
LOGITS_PAD = 128       # lane-dense padded logits width
VOCAB = 64
LN_EPS = 1e-12
WEIGHT_DTYPE = jnp.bfloat16   # MXU bf16 path on v6e/v7x; fine on v5e too


# ----------------------------- kernel ----------------------------------------
def _layer_norm(x, g, b):
    mu = jnp.mean(x, axis=-1, keepdims=True)
    var = jnp.mean(jnp.square(x - mu), axis=-1, keepdims=True)
    return (x - mu) * jax.lax.rsqrt(var + LN_EPS) * g + b


def xlnet_fused_kernel(x_ref, bias_ref,
                       wqkv_ref, bqkv_ref, wo_ref, bo_ref, g1_ref, be1_ref,
                       w1_ref, b1_ref, w2_ref, b2_ref, g2_ref, be2_ref,
                       wcls_ref, bcls_ref,
                       o_ref):
    """Fused mini-XLNet: NUM_LAYERS transformer layers + classifier, whole batch.

    x_ref:    (B*S, D) f32 token embeddings
    bias_ref: (B*S, B*S) f32 block-diagonal additive attention bias
              (cross-example keys and padded keys get -1e9), precomputed in wrapper
    w*_ref:   per-layer weights stacked on a leading NUM_LAYERS axis (bf16 matmul weights)
    o_ref:    (B, 128) f32 lane-dense padded logits of the last token per example
    """
    # TODO(synk): XLNet's relative-positional / two-stream attention is replaced by
    # standard scaled dot-product self-attention (no pretrained checkpoint available).
    x = x_ref[...]                           # (B*S, D) f32 activations
    bias = bias_ref[...]                     # (B*S, B*S) additive mask
    scale = 1.0 / math.sqrt(HEAD_DIM)

    for l in range(NUM_LAYERS):              # unrolled; all weights stay resident in VMEM
        # ---- fused QKV projection: one (B*S, D) @ (D, 3D) matmul -------------
        qkv = jnp.dot(x.astype(WEIGHT_DTYPE), wqkv_ref[l],
                      preferred_element_type=jnp.float32) + bqkv_ref[l]   # (B*S, 3D)

        # ---- attention: batch folded into the matmul via block-diagonal bias,
        #      loop only over heads; contexts stay in vregs -------------------
        ctx_heads = []
        for h in range(NUM_HEADS):
            q_h = qkv[:, h * HEAD_DIM:(h + 1) * HEAD_DIM]                   # (B*S, hd)
            k_h = qkv[:, HIDDEN + h * HEAD_DIM:HIDDEN + (h + 1) * HEAD_DIM]
            v_h = qkv[:, 2 * HIDDEN + h * HEAD_DIM:2 * HIDDEN + (h + 1) * HEAD_DIM]
            s = jnp.einsum('qd,kd->qk', q_h, k_h,
                           preferred_element_type=jnp.float32) * scale + bias
            s = s - jnp.max(s, axis=-1, keepdims=True)
            p = jnp.exp(s)
            p = p * pl.reciprocal(jnp.sum(p, axis=-1, keepdims=True), approx=True)
            ctx_heads.append(jnp.dot(p, v_h, preferred_element_type=jnp.float32))
        # one lane-axis concat per layer; no VMEM scratch round-trip
        ctx = jnp.concatenate(ctx_heads, axis=-1)                           # (B*S, D)

        # ---- single output projection over all heads / all tokens ------------
        attn = jnp.dot(ctx.astype(WEIGHT_DTYPE), wo_ref[l],
                       preferred_element_type=jnp.float32) + bo_ref[l]
        x = _layer_norm(x + attn, g1_ref[l], be1_ref[l])      # post-LN, f32

        # ---- FFN --------------------------------------------------------------
        ff = jnp.dot(x.astype(WEIGHT_DTYPE), w1_ref[l],
                     preferred_element_type=jnp.float32) + b1_ref[l]
        # TODO(synk): PyTorch/HF XLNet uses exact erf GELU; tanh approximation used here.
        ff = jax.nn.gelu(ff, approximate=True)
        ff = jnp.dot(ff.astype(WEIGHT_DTYPE), w2_ref[l],
                     preferred_element_type=jnp.float32) + b2_ref[l]
        x = _layer_norm(x + ff, g2_ref[l], be2_ref[l])

    # ---- classifier head on last-token rows only, lane-dense (B, 128) ---------
    # bert_output[0][:, -1, :] (left padding) -> static row gather in-kernel.
    # nn.Dropout(p=0.1) is identity at inference time.
    x_last = jnp.concatenate(
        [x[b * SEQ + SEQ - 1: b * SEQ + SEQ, :] for b in range(BATCH)], axis=0)  # (B, D)
    o_ref[...] = jnp.dot(x_last.astype(WEIGHT_DTYPE), wcls_ref[...],
                         preferred_element_type=jnp.float32) + bcls_ref[...]


# ----------------------------- wrapper ----------------------------------------
def xlnet_classify(input_ids, attention_mask, params):
    # Glue: embedding lookup (gather over VOCAB) stays in plain JAX.
    x = params["embedding"][input_ids].astype(jnp.float32).reshape(TOKENS, HIDDEN)

    # Block-diagonal additive attention bias, built once per call in the wrapper:
    # bias[bq*S+q, bk*S+k] = (-1e9 if bq != bk else 0) + (-1e9 if key (bk,k) is padding).
    neg_keys = (1.0 - attention_mask.astype(jnp.float32)) * -1e9            # (B, S)
    cross = jnp.where(jnp.eye(BATCH, dtype=bool), 0.0, -1e9)                # (B, B)
    bias = cross[:, None, :, None] + neg_keys[None, None, :, :]             # (B,1,B,S)
    bias = jnp.broadcast_to(bias, (BATCH, SEQ, BATCH, SEQ)).reshape(TOKENS, TOKENS)

    args = (x, bias, *params["stacked"])
    logits_pad = pl.pallas_call(
        xlnet_fused_kernel,
        out_shape=jax.ShapeDtypeStruct((BATCH, LOGITS_PAD), jnp.float32),
        # no grid: single invocation, whole (tiny) operands resident in VMEM
        compiler_params=pltpu.CompilerParams(vmem_limit_bytes=32 * 1024 * 1024),
    )(*args)

    return logits_pad[:, :NUM_CLASSES]                                      # (B, 3)


# ----------------------------- param init --------------------------------------
def init_params(key):
    def normal(k, shape, scale=0.02):
        return scale * jax.random.normal(k, shape, dtype=jnp.float32)

    keys = jax.random.split(key, 2 + NUM_LAYERS)
    emb = normal(keys[0], (VOCAB, HIDDEN))
    wcls = normal(keys[1], (HIDDEN, NUM_CLASSES))
    wcls_pad = jnp.zeros((HIDDEN, LOGITS_PAD), jnp.float32).at[:, :NUM_CLASSES].set(wcls)
    bcls_pad = jnp.zeros((1, LOGITS_PAD), jnp.float32)

    wqkv, bqkv, wo, bo = [], [], [], []
    g1, be1, w1, b1, w2, b2, g2, be2 = [], [], [], [], [], [], [], []
    for l in range(NUM_LAYERS):
        lk = jax.random.split(keys[2 + l], 6)
        wq = normal(lk[0], (HIDDEN, HIDDEN))
        wk = normal(lk[1], (HIDDEN, HIDDEN))
        wv = normal(lk[2], (HIDDEN, HIDDEN))
        wqkv.append(jnp.concatenate([wq, wk, wv], axis=1))                  # (D, 3D)
        bqkv.append(jnp.zeros((1, 3 * HIDDEN), jnp.float32))
        wo.append(normal(lk[3], (HIDDEN, HIDDEN)))
        bo.append(jnp.zeros((1, HIDDEN), jnp.float32))
        g1.append(jnp.ones((1, HIDDEN), jnp.float32))
        be1.append(jnp.zeros((1, HIDDEN), jnp.float32))
        w1.append(normal(lk[4], (HIDDEN, FFN)))
        b1.append(jnp.zeros((1, FFN), jnp.float32))
        w2.append(normal(lk[5], (FFN, HIDDEN)))
        b2.append(jnp.zeros((1, HIDDEN), jnp.float32))
        g2.append(jnp.ones((1, HIDDEN), jnp.float32))
        be2.append(jnp.zeros((1, HIDDEN), jnp.float32))

    def stack(xs, dtype=jnp.float32):
        return jnp.stack(xs, axis=0).astype(dtype)

    stacked = [
        stack(wqkv, WEIGHT_DTYPE), stack(bqkv),
        stack(wo, WEIGHT_DTYPE),   stack(bo),
        stack(g1), stack(be1),
        stack(w1, WEIGHT_DTYPE),   stack(b1),
        stack(w2, WEIGHT_DTYPE),   stack(b2),
        stack(g2), stack(be2),
        wcls_pad.astype(WEIGHT_DTYPE), bcls_pad,
    ]
    return {"embedding": emb, "stacked": stacked}


# ----------------------------- main ---------------------------------------------
if __name__ == "__main__":
    key = jax.random.PRNGKey(0)
    pkey, ikey = jax.random.split(key)
    params = init_params(pkey)

    input_ids = jax.random.randint(ikey, (BATCH, SEQ), 0, VOCAB, dtype=jnp.int32)
    # XLNet-style left padding: first example has 2 pad positions masked out.
    attention_mask = jnp.array(
        [[0, 0, 1, 1, 1, 1, 1, 1],
         [1, 1, 1, 1, 1, 1, 1, 1]], dtype=jnp.float32)

    logits = jax.jit(xlnet_classify)(input_ids, attention_mask, params)
    logits = jax.block_until_ready(logits)
    assert logits.shape == (BATCH, NUM_CLASSES)
    assert bool(jnp.all(jnp.isfinite(logits)))
    print("KERNEL_OK")
</pallas_src>

<mosaic_0001>
module attributes {stable_mosaic.version = 11 : i64} {
  func.func @xlnet_fused_kernel(%arg0: memref<16x32xf32, #tpu.memory_space<vmem>>, %arg1: memref<16x16xf32, #tpu.memory_space<vmem>>, %arg2: memref<2x32x96xbf16, #tpu.memory_space<vmem>>, %arg3: memref<2x1x96xf32, #tpu.memory_space<vmem>>, %arg4: memref<2x32x32xbf16, #tpu.memory_space<vmem>>, %arg5: memref<2x1x32xf32, #tpu.memory_space<vmem>>, %arg6: memref<2x1x32xf32, #tpu.memory_space<vmem>>, %arg7: memref<2x1x32xf32, #tpu.memory_space<vmem>>, %arg8: memref<2x32x64xbf16, #tpu.memory_space<vmem>>, %arg9: memref<2x1x64xf32, #tpu.memory_space<vmem>>, %arg10: memref<2x64x32xbf16, #tpu.memory_space<vmem>>, %arg11: memref<2x1x32xf32, #tpu.memory_space<vmem>>, %arg12: memref<2x1x32xf32, #tpu.memory_space<vmem>>, %arg13: memref<2x1x32xf32, #tpu.memory_space<vmem>>, %arg14: memref<32x128xbf16, #tpu.memory_space<vmem>>, %arg15: memref<1x128xf32, #tpu.memory_space<vmem>>, %arg16: memref<2x128xf32, #tpu.memory_space<vmem>>) attributes {dimension_semantics = [], scalar_prefetch = 0 : i64, scratch_operands = 0 : i64, tpu.core_type = #tpu.core_type<tc>} {
    %c0 = arith.constant 0 : index
    %c0_0 = arith.constant 0 : index
    %0 = vector.load %arg0[%c0, %c0_0] : memref<16x32xf32, #tpu.memory_space<vmem>>, vector<16x32xf32>
    %c0_1 = arith.constant 0 : index
    %c0_2 = arith.constant 0 : index
    %1 = vector.load %arg1[%c0_1, %c0_2] : memref<16x16xf32, #tpu.memory_space<vmem>>, vector<16x16xf32>
    %2 = arith.truncf %0 : vector<16x32xf32> to vector<16x32xbf16>
    %c0_3 = arith.constant 0 : index
    %c0_4 = arith.constant 0 : index
    %c0_5 = arith.constant 0 : index
    %3 = vector.load %arg2[%c0_3, %c0_4, %c0_5] : memref<2x32x96xbf16, #tpu.memory_space<vmem>>, vector<1x32x96xbf16>
    %4 = vector.shape_cast %3 : vector<1x32x96xbf16> to vector<32x96xbf16>
    %cst = arith.constant dense<0.000000e+00> : vector<16x96xf32>
    %5 = tpu.matmul %2, %4, %cst {dimension_numbers = #tpu.dot_dimension_numbers<[1], [0], [0], [1], [0, 0, 1, 1], [], []>} : vector<16x32xbf16>, vector<32x96xbf16>, vector<16x96xf32> -> vector<16x96xf32>
    %c0_6 = arith.constant 0 : index
    %c0_7 = arith.constant 0 : index
    %c0_8 = arith.constant 0 : index
    %6 = vector.load %arg3[%c0_6, %c0_7, %c0_8] : memref<2x1x96xf32, #tpu.memory_space<vmem>>, vector<1x1x96xf32>
    %7 = vector.shape_cast %6 : vector<1x1x96xf32> to vector<1x96xf32>
    %8 = vector.broadcast %7 : vector<1x96xf32> to vector<16x96xf32>
    %9 = arith.addf %5, %8 : vector<16x96xf32>
    %10 = vector.extract_strided_slice %9 {offsets = [0, 0], sizes = [16, 8], strides = [1, 1]} : vector<16x96xf32> to vector<16x8xf32>
    %11 = vector.extract_strided_slice %9 {offsets = [0, 32], sizes = [16, 8], strides = [1, 1]} : vector<16x96xf32> to vector<16x8xf32>
    %12 = vector.extract_strided_slice %9 {offsets = [0, 64], sizes = [16, 8], strides = [1, 1]} : vector<16x96xf32> to vector<16x8xf32>
    "tpu.trace_start"() <{level = 10 : i32, message = "qd,kd->qk"}> : () -> ()
    %cst_9 = arith.constant dense<0.000000e+00> : vector<16x16xf32>
    %13 = tpu.matmul %10, %11, %cst_9 {dimension_numbers = #tpu.dot_dimension_numbers<[1], [1], [0], [0], [0, 0, 1, 0], [], []>} : vector<16x8xf32>, vector<16x8xf32>, vector<16x16xf32> -> vector<16x16xf32>
    "tpu.trace_stop"() : () -> ()
    %cst_10 = arith.constant 0.353553385 : f32
    %14 = vector.broadcast %cst_10 : f32 to vector<16x16xf32>
    %15 = arith.mulf %13, %14 : vector<16x16xf32>
    %16 = arith.addf %15, %1 : vector<16x16xf32>
    %cst_11 = arith.constant dense<0xFF800000> : vector<16xf32>
    %17 = vector.multi_reduction <maximumf>, %16, %cst_11 [1] : vector<16x16xf32> to vector<16xf32>
    %18 = vector.shape_cast %17 : vector<16xf32> to vector<16x1xf32>
    %19 = vector.broadcast %18 : vector<16x1xf32> to vector<16x16xf32>
    %20 = arith.subf %16, %19 : vector<16x16xf32>
    %21 = math.exp %20 : vector<16x16xf32>
    %cst_12 = arith.constant dense<0.000000e+00> : vector<16xf32>
    %22 = vector.multi_reduction <add>, %21, %cst_12 [1] : vector<16x16xf32> to vector<16xf32>
    %23 = vector.shape_cast %22 : vector<16xf32> to vector<16x1xf32>
    %24 = tpu.reciprocal %23 {approx = true} : vector<16x1xf32> -> vector<16x1xf32>
    %25 = vector.broadcast %24 : vector<16x1xf32> to vector<16x16xf32>
    %26 = arith.mulf %21, %25 : vector<16x16xf32>
    %cst_13 = arith.constant dense<0.000000e+00> : vector<16x8xf32>
    %27 = tpu.matmul %26, %12, %cst_13 {dimension_numbers = #tpu.dot_dimension_numbers<[1], [0], [0], [1], [0, 0, 1, 1], [], []>} : vector<16x16xf32>, vector<16x8xf32>, vector<16x8xf32> -> vector<16x8xf32>
    %28 = vector.extract_strided_slice %9 {offsets = [0, 8], sizes = [16, 8], strides = [1, 1]} : vector<16x96xf32> to vector<16x8xf32>
    %29 = vector.extract_strided_slice %9 {offsets = [0, 40], sizes = [16, 8], strides = [1, 1]} : vector<16x96xf32> to vector<16x8xf32>
    %30 = vector.extract_strided_slice %9 {offsets = [0, 72], sizes = [16, 8], strides = [1, 1]} : vector<16x96xf32> to vector<16x8xf32>
    "tpu.trace_start"() <{level = 10 : i32, message = "qd,kd->qk"}> : () -> ()
    %cst_14 = arith.constant dense<0.000000e+00> : vector<16x16xf32>
    %31 = tpu.matmul %28, %29, %cst_14 {dimension_numbers = #tpu.dot_dimension_numbers<[1], [1], [0], [0], [0, 0, 1, 0], [], []>} : vector<16x8xf32>, vector<16x8xf32>, vector<16x16xf32> -> vector<16x16xf32>
    "tpu.trace_stop"() : () -> ()
    %cst_15 = arith.constant 0.353553385 : f32
    %32 = vector.broadcast %cst_15 : f32 to vector<16x16xf32>
    %33 = arith.mulf %31, %32 : vector<16x16xf32>
    %34 = arith.addf %33, %1 : vector<16x16xf32>
    %cst_16 = arith.constant dense<0xFF800000> : vector<16xf32>
    %35 = vector.multi_reduction <maximumf>, %34, %cst_16 [1] : vector<16x16xf32> to vector<16xf32>
    %36 = vector.shape_cast %35 : vector<16xf32> to vector<16x1xf32>
    %37 = vector.broadcast %36 : vector<16x1xf32> to vector<16x16xf32>
    %38 = arith.subf %34, %37 : vector<16x16xf32>
    %39 = math.exp %38 : vector<16x16xf32>
    %cst_17 = arith.constant dense<0.000000e+00> : vector<16xf32>
    %40 = vector.multi_reduction <add>, %39, %cst_17 [1] : vector<16x16xf32> to vector<16xf32>
    %41 = vector.shape_cast %40 : vector<16xf32> to vector<16x1xf32>
    %42 = tpu.reciprocal %41 {approx = true} : vector<16x1xf32> -> vector<16x1xf32>
    %43 = vector.broadcast %42 : vector<16x1xf32> to vector<16x16xf32>
    %44 = arith.mulf %39, %43 : vector<16x16xf32>
    %cst_18 = arith.constant dense<0.000000e+00> : vector<16x8xf32>
    %45 = tpu.matmul %44, %30, %cst_18 {dimension_numbers = #tpu.dot_dimension_numbers<[1], [0], [0], [1], [0, 0, 1, 1], [], []>} : vector<16x16xf32>, vector<16x8xf32>, vector<16x8xf32> -> vector<16x8xf32>
    %46 = vector.extract_strided_slice %9 {offsets = [0, 16], sizes = [16, 8], strides = [1, 1]} : vector<16x96xf32> to vector<16x8xf32>
    %47 = vector.extract_strided_slice %9 {offsets = [0, 48], sizes = [16, 8], strides = [1, 1]} : vector<16x96xf32> to vector<16x8xf32>
    %48 = vector.extract_strided_slice %9 {offsets = [0, 80], sizes = [16, 8], strides = [1, 1]} : vector<16x96xf32> to vector<16x8xf32>
    "tpu.trace_start"() <{level = 10 : i32, message = "qd,kd->qk"}> : () -> ()
    %cst_19 = arith.constant dense<0.000000e+00> : vector<16x16xf32>
    %49 = tpu.matmul %46, %47, %cst_19 {dimension_numbers = #tpu.dot_dimension_numbers<[1], [1], [0], [0], [0, 0, 1, 0], [], []>} : vector<16x8xf32>, vector<16x8xf32>, vector<16x16xf32> -> vector<16x16xf32>
    "tpu.trace_stop"() : () -> ()
    %cst_20 = arith.constant 0.353553385 : f32
    %50 = vector.broadcast %cst_20 : f32 to vector<16x16xf32>
    %51 = arith.mulf %49, %50 : vector<16x16xf32>
    %52 = arith.addf %51, %1 : vector<16x16xf32>
    %cst_21 = arith.constant dense<0xFF800000> : vector<16xf32>
    %53 = vector.multi_reduction <maximumf>, %52, %cst_21 [1] : vector<16x16xf32> to vector<16xf32>
    %54 = vector.shape_cast %53 : vector<16xf32> to vector<16x1xf32>
    %55 = vector.broadcast %54 : vector<16x1xf32> to vector<16x16xf32>
    %56 = arith.subf %52, %55 : vector<16x16xf32>
    %57 = math.exp %56 : vector<16x16xf32>
    %cst_22 = arith.constant dense<0.000000e+00> : vector<16xf32>
    %58 = vector.multi_reduction <add>, %57, %cst_22 [1] : vector<16x16xf32> to vector<16xf32>
    %59 = vector.shape_cast %58 : vector<16xf32> to vector<16x1xf32>
    %60 = tpu.reciprocal %59 {approx = true} : vector<16x1xf32> -> vector<16x1xf32>
    %61 = vector.broadcast %60 : vector<16x1xf32> to vector<16x16xf32>
    %62 = arith.mulf %57, %61 : vector<16x16xf32>
    %cst_23 = arith.constant dense<0.000000e+00> : vector<16x8xf32>
    %63 = tpu.matmul %62, %48, %cst_23 {dimension_numbers = #tpu.dot_dimension_numbers<[1], [0], [0], [1], [0, 0, 1, 1], [], []>} : vector<16x16xf32>, vector<16x8xf32>, vector<16x8xf32> -> vector<16x8xf32>
    %64 = vector.extract_strided_slice %9 {offsets = [0, 24], sizes = [16, 8], strides = [1, 1]} : vector<16x96xf32> to vector<16x8xf32>
    %65 = vector.extract_strided_slice %9 {offsets = [0, 56], sizes = [16, 8], strides = [1, 1]} : vector<16x96xf32> to vector<16x8xf32>
    %66 = vector.extract_strided_slice %9 {offsets = [0, 88], sizes = [16, 8], strides = [1, 1]} : vector<16x96xf32> to vector<16x8xf32>
    "tpu.trace_start"() <{level = 10 : i32, message = "qd,kd->qk"}> : () -> ()
    %cst_24 = arith.constant dense<0.000000e+00> : vector<16x16xf32>
    %67 = tpu.matmul %64, %65, %cst_24 {dimension_numbers = #tpu.dot_dimension_numbers<[1], [1], [0], [0], [0, 0, 1, 0], [], []>} : vector<16x8xf32>, vector<16x8xf32>, vector<16x16xf32> -> vector<16x16xf32>
    "tpu.trace_stop"() : () -> ()
    %cst_25 = arith.constant 0.353553385 : f32
    %68 = vector.broadcast %cst_25 : f32 to vector<16x16xf32>
    %69 = arith.mulf %67, %68 : vector<16x16xf32>
    %70 = arith.addf %69, %1 : vector<16x16xf32>
    %cst_26 = arith.constant dense<0xFF800000> : vector<16xf32>
    %71 = vector.multi_reduction <maximumf>, %70, %cst_26 [1] : vector<16x16xf32> to vector<16xf32>
    %72 = vector.shape_cast %71 : vector<16xf32> to vector<16x1xf32>
    %73 = vector.broadcast %72 : vector<16x1xf32> to vector<16x16xf32>
    %74 = arith.subf %70, %73 : vector<16x16xf32>
    %75 = math.exp %74 : vector<16x16xf32>
    %cst_27 = arith.constant dense<0.000000e+00> : vector<16xf32>
    %76 = vector.multi_reduction <add>, %75, %cst_27 [1] : vector<16x16xf32> to vector<16xf32>
    %77 = vector.shape_cast %76 : vector<16xf32> to vector<16x1xf32>
    %78 = tpu.reciprocal %77 {approx = true} : vector<16x1xf32> -> vector<16x1xf32>
    %79 = vector.broadcast %78 : vector<16x1xf32> to vector<16x16xf32>
    %80 = arith.mulf %75, %79 : vector<16x16xf32>
    %cst_28 = arith.constant dense<0.000000e+00> : vector<16x8xf32>
    %81 = tpu.matmul %80, %66, %cst_28 {dimension_numbers = #tpu.dot_dimension_numbers<[1], [0], [0], [1], [0, 0, 1, 1], [], []>} : vector<16x16xf32>, vector<16x8xf32>, vector<16x8xf32> -> vector<16x8xf32>
    %82 = tpu.concatenate %27, %45, %63, %81 in 1 : vector<16x8xf32>, vector<16x8xf32>, vector<16x8xf32>, vector<16x8xf32> -> vector<16x32xf32>
    %83 = arith.truncf %82 : vector<16x32xf32> to vector<16x32xbf16>
    %c0_29 = arith.constant 0 : index
    %c0_30 = arith.constant 0 : index
    %c0_31 = arith.constant 0 : index
    %84 = vector.load %arg4[%c0_29, %c0_30, %c0_31] : memref<2x32x32xbf16, #tpu.memory_space<vmem>>, vector<1x32x32xbf16>
    %85 = vector.shape_cast %84 : vector<1x32x32xbf16> to vector<32x32xbf16>
    %cst_32 = arith.constant dense<0.000000e+00> : vector<16x32xf32>
    %86 = tpu.matmul %83, %85, %cst_32 {dimension_numbers = #tpu.dot_dimension_numbers<[1], [0], [0], [1], [0, 0, 1, 1], [], []>} : vector<16x32xbf16>, vector<32x32xbf16>, vector<16x32xf32> -> vector<16x32xf32>
    %c0_33 = arith.constant 0 : index
    %c0_34 = arith.constant 0 : index
    %c0_35 = arith.constant 0 : index
    %87 = vector.load %arg5[%c0_33, %c0_34, %c0_35] : memref<2x1x32xf32, #tpu.memory_space<vmem>>, vector<1x1x32xf32>
    %88 = vector.shape_cast %87 : vector<1x1x32xf32> to vector<1x32xf32>
    %89 = vector.broadcast %88 : vector<1x32xf32> to vector<16x32xf32>
    %90 = arith.addf %86, %89 : vector<16x32xf32>
    %91 = arith.addf %0, %90 : vector<16x32xf32>
    %c0_36 = arith.constant 0 : index
    %c0_37 = arith.constant 0 : index
    %c0_38 = arith.constant 0 : index
    %92 = vector.load %arg6[%c0_36, %c0_37, %c0_38] : memref<2x1x32xf32, #tpu.memory_space<vmem>>, vector<1x1x32xf32>
    %93 = vector.shape_cast %92 : vector<1x1x32xf32> to vector<1x32xf32>
    %c0_39 = arith.constant 0 : index
    %c0_40 = arith.constant 0 : index
    %c0_41 = arith.constant 0 : index
    %94 = vector.load %arg7[%c0_39, %c0_40, %c0_41] : memref<2x1x32xf32, #tpu.memory_space<vmem>>, vector<1x1x32xf32>
    %95 = vector.shape_cast %94 : vector<1x1x32xf32> to vector<1x32xf32>
    %cst_42 = arith.constant dense<0.000000e+00> : vector<16xf32>
    %96 = vector.multi_reduction <add>, %91, %cst_42 [1] : vector<16x32xf32> to vector<16xf32>
    %97 = vector.shape_cast %96 : vector<16xf32> to vector<16x1xf32>
    %cst_43 = arith.constant 3.200000e+01 : f32
    %98 = vector.broadcast %cst_43 : f32 to vector<16x1xf32>
    %99 = arith.divf %97, %98 : vector<16x1xf32>
    %100 = vector.broadcast %99 : vector<16x1xf32> to vector<16x32xf32>
    %101 = arith.subf %91, %100 : vector<16x32xf32>
    %102 = arith.mulf %101, %101 : vector<16x32xf32>
    %cst_44 = arith.constant dense<0.000000e+00> : vector<16xf32>
    %103 = vector.multi_reduction <add>, %102, %cst_44 [1] : vector<16x32xf32> to vector<16xf32>
    %104 = vector.shape_cast %103 : vector<16xf32> to vector<16x1xf32>
    %cst_45 = arith.constant 3.200000e+01 : f32
    %105 = vector.broadcast %cst_45 : f32 to vector<16x1xf32>
    %106 = arith.divf %104, %105 : vector<16x1xf32>
    %107 = vector.broadcast %99 : vector<16x1xf32> to vector<16x32xf32>
    %108 = arith.subf %91, %107 : vector<16x32xf32>
    %cst_46 = arith.constant 9.99999996E-13 : f32
    %109 = vector.broadcast %cst_46 : f32 to vector<16x1xf32>
    %110 = arith.addf %106, %109 : vector<16x1xf32>
    %111 = math.rsqrt %110 : vector<16x1xf32>
    %112 = vector.broadcast %111 : vector<16x1xf32> to vector<16x32xf32>
    %113 = arith.mulf %108, %112 : vector<16x32xf32>
    %114 = vector.broadcast %93 : vector<1x32xf32> to vector<16x32xf32>
    %115 = arith.mulf %113, %114 : vector<16x32xf32>
    %116 = vector.broadcast %95 : vector<1x32xf32> to vector<16x32xf32>
    %117 = arith.addf %115, %116 : vector<16x32xf32>
    %118 = arith.truncf %117 : vector<16x32xf32> to vector<16x32xbf16>
    %c0_47 = arith.constant 0 : index
    %c0_48 = arith.constant 0 : index
    %c0_49 = arith.constant 0 : index
    %119 = vector.load %arg8[%c0_47, %c0_48, %c0_49] : memref<2x32x64xbf16, #tpu.memory_space<vmem>>, vector<1x32x64xbf16>
    %120 = vector.shape_cast %119 : vector<1x32x64xbf16> to vector<32x64xbf16>
    %cst_50 = arith.constant dense<0.000000e+00> : vector<16x64xf32>
    %121 = tpu.matmul %118, %120, %cst_50 {dimension_numbers = #tpu.dot_dimension_numbers<[1], [0], [0], [1], [0, 0, 1, 1], [], []>} : vector<16x32xbf16>, vector<32x64xbf16>, vector<16x64xf32> -> vector<16x64xf32>
    %c0_51 = arith.constant 0 : index
    %c0_52 = arith.constant 0 : index
    %c0_53 = arith.constant 0 : index
    %122 = vector.load %arg9[%c0_51, %c0_52, %c0_53] : memref<2x1x64xf32, #tpu.memory_space<vmem>>, vector<1x1x64xf32>
    %123 = vector.shape_cast %122 : vector<1x1x64xf32> to vector<1x64xf32>
    %124 = vector.broadcast %123 : vector<1x64xf32> to vector<16x64xf32>
    %125 = arith.addf %121, %124 : vector<16x64xf32>
    %126 = arith.mulf %125, %125 : vector<16x64xf32>
    %127 = arith.mulf %125, %126 : vector<16x64xf32>
    %cst_54 = arith.constant 4.471500e-02 : f32
    %128 = vector.broadcast %cst_54 : f32 to vector<16x64xf32>
    %129 = arith.mulf %128, %127 : vector<16x64xf32>
    %130 = arith.addf %125, %129 : vector<16x64xf32>
    %cst_55 = arith.constant 0.797884583 : f32
    %131 = vector.broadcast %cst_55 : f32 to vector<16x64xf32>
    %132 = arith.mulf %131, %130 : vector<16x64xf32>
    %133 = math.tanh %132 : vector<16x64xf32>
    %cst_56 = arith.constant 1.000000e+00 : f32
    %134 = vector.broadcast %cst_56 : f32 to vector<16x64xf32>
    %135 = arith.addf %134, %133 : vector<16x64xf32>
    %cst_57 = arith.constant 5.000000e-01 : f32
    %136 = vector.broadcast %cst_57 : f32 to vector<16x64xf32>
    %137 = arith.mulf %136, %135 : vector<16x64xf32>
    %138 = arith.mulf %125, %137 : vector<16x64xf32>
    %139 = arith.truncf %138 : vector<16x64xf32> to vector<16x64xbf16>
    %c0_58 = arith.constant 0 : index
    %c0_59 = arith.constant 0 : index
    %c0_60 = arith.constant 0 : index
    %140 = vector.load %arg10[%c0_58, %c0_59, %c0_60] : memref<2x64x32xbf16, #tpu.memory_space<vmem>>, vector<1x64x32xbf16>
    %141 = vector.shape_cast %140 : vector<1x64x32xbf16> to vector<64x32xbf16>
    %cst_61 = arith.constant dense<0.000000e+00> : vector<16x32xf32>
    %142 = tpu.matmul %139, %141, %cst_61 {dimension_numbers = #tpu.dot_dimension_numbers<[1], [0], [0], [1], [0, 0, 1, 1], [], []>} : vector<16x64xbf16>, vector<64x32xbf16>, vector<16x32xf32> -> vector<16x32xf32>
    %c0_62 = arith.constant 0 : index
    %c0_63 = arith.constant 0 : index
    %c0_64 = arith.constant 0 : index
    %143 = vector.load %arg11[%c0_62, %c0_63, %c0_64] : memref<2x1x32xf32, #tpu.memory_space<vmem>>, vector<1x1x32xf32>
    %144 = vector.shape_cast %143 : vector<1x1x32xf32> to vector<1x32xf32>
    %145 = vector.broadcast %144 : vector<1x32xf32> to vector<16x32xf32>
    %146 = arith.addf %142, %145 : vector<16x32xf32>
    %147 = arith.addf %117, %146 : vector<16x32xf32>
    %c0_65 = arith.constant 0 : index
    %c0_66 = arith.constant 0 : index
    %c0_67 = arith.constant 0 : index
    %148 = vector.load %arg12[%c0_65, %c0_66, %c0_67] : memref<2x1x32xf32, #tpu.memory_space<vmem>>, vector<1x1x32xf32>
    %149 = vector.shape_cast %148 : vector<1x1x32xf32> to vector<1x32xf32>
    %c0_68 = arith.constant 0 : index
    %c0_69 = arith.constant 0 : index
    %c0_70 = arith.constant 0 : index
    %150 = vector.load %arg13[%c0_68, %c0_69, %c0_70] : memref<2x1x32xf32, #tpu.memory_space<vmem>>, vector<1x1x32xf32>
    %151 = vector.shape_cast %150 : vector<1x1x32xf32> to vector<1x32xf32>
    %cst_71 = arith.constant dense<0.000000e+00> : vector<16xf32>
    %152 = vector.multi_reduction <add>, %147, %cst_71 [1] : vector<16x32xf32> to vector<16xf32>
    %153 = vector.shape_cast %152 : vector<16xf32> to vector<16x1xf32>
    %cst_72 = arith.constant 3.200000e+01 : f32
    %154 = vector.broadcast %cst_72 : f32 to vector<16x1xf32>
    %155 = arith.divf %153, %154 : vector<16x1xf32>
    %156 = vector.broadcast %155 : vector<16x1xf32> to vector<16x32xf32>
    %157 = arith.subf %147, %156 : vector<16x32xf32>
    %158 = arith.mulf %157, %157 : vector<16x32xf32>
    %cst_73 = arith.constant dense<0.000000e+00> : vector<16xf32>
    %159 = vector.multi_reduction <add>, %158, %cst_73 [1] : vector<16x32xf32> to vector<16xf32>
    %160 = vector.shape_cast %159 : vector<16xf32> to vector<16x1xf32>
    %cst_74 = arith.constant 3.200000e+01 : f32
    %161 = vector.broadcast %cst_74 : f32 to vector<16x1xf32>
    %162 = arith.divf %160, %161 : vector<16x1xf32>
    %163 = vector.broadcast %155 : vector<16x1xf32> to vector<16x32xf32>
    %164 = arith.subf %147, %163 : vector<16x32xf32>
    %cst_75 = arith.constant 9.99999996E-13 : f32
    %165 = vector.broadcast %cst_75 : f32 to vector<16x1xf32>
    %166 = arith.addf %162, %165 : vector<16x1xf32>
    %167 = math.rsqrt %166 : vector<16x1xf32>
    %168 = vector.broadcast %167 : vector<16x1xf32> to vector<16x32xf32>
    %169 = arith.mulf %164, %168 : vector<16x32xf32>
    %170 = vector.broadcast %149 : vector<1x32xf32> to vector<16x32xf32>
    %171 = arith.mulf %169, %170 : vector<16x32xf32>
    %172 = vector.broadcast %151 : vector<1x32xf32> to vector<16x32xf32>
    %173 = arith.addf %171, %172 : vector<16x32xf32>
    %174 = arith.truncf %173 : vector<16x32xf32> to vector<16x32xbf16>
    %c1 = arith.constant 1 : index
    %c0_76 = arith.constant 0 : index
    %c0_77 = arith.constant 0 : index
    %175 = vector.load %arg2[%c1, %c0_76, %c0_77] : memref<2x32x96xbf16, #tpu.memory_space<vmem>>, vector<1x32x96xbf16>
    %176 = vector.shape_cast %175 : vector<1x32x96xbf16> to vector<32x96xbf16>
    %cst_78 = arith.constant dense<0.000000e+00> : vector<16x96xf32>
    %177 = tpu.matmul %174, %176, %cst_78 {dimension_numbers = #tpu.dot_dimension_numbers<[1], [0], [0], [1], [0, 0, 1, 1], [], []>} : vector<16x32xbf16>, vector<32x96xbf16>, vector<16x96xf32> -> vector<16x96xf32>
    %c1_79 = arith.constant 1 : index
    %c0_80 = arith.constant 0 : index
    %c0_81 = arith.constant 0 : index
    %178 = vector.load %arg3[%c1_79, %c0_80, %c0_81] : memref<2x1x96xf32, #tpu.memory_space<vmem>>, vector<1x1x96xf32>
    %179 = vector.shape_cast %178 : vector<1x1x96xf32> to vector<1x96xf32>
    %180 = vector.broadcast %179 : vector<1x96xf32> to vector<16x96xf32>
    %181 = arith.addf %177, %180 : vector<16x96xf32>
    %182 = vector.extract_strided_slice %181 {offsets = [0, 0], sizes = [16, 8], strides = [1, 1]} : vector<16x96xf32> to vector<16x8xf32>
    %183 = vector.extract_strided_slice %181 {offsets = [0, 32], sizes = [16, 8], strides = [1, 1]} : vector<16x96xf32> to vector<16x8xf32>
    %184 = vector.extract_strided_slice %181 {offsets = [0, 64], sizes = [16, 8], strides = [1, 1]} : vector<16x96xf32> to vector<16x8xf32>
    "tpu.trace_start"() <{level = 10 : i32, message = "qd,kd->qk"}> : () -> ()
    %cst_82 = arith.constant dense<0.000000e+00> : vector<16x16xf32>
    %185 = tpu.matmul %182, %183, %cst_82 {dimension_numbers = #tpu.dot_dimension_numbers<[1], [1], [0], [0], [0, 0, 1, 0], [], []>} : vector<16x8xf32>, vector<16x8xf32>, vector<16x16xf32> -> vector<16x16xf32>
    "tpu.trace_stop"() : () -> ()
    %cst_83 = arith.constant 0.353553385 : f32
    %186 = vector.broadcast %cst_83 : f32 to vector<16x16xf32>
    %187 = arith.mulf %185, %186 : vector<16x16xf32>
    %188 = arith.addf %187, %1 : vector<16x16xf32>
    %cst_84 = arith.constant dense<0xFF800000> : vector<16xf32>
    %189 = vector.multi_reduction <maximumf>, %188, %cst_84 [1] : vector<16x16xf32> to vector<16xf32>
    %190 = vector.shape_cast %189 : vector<16xf32> to vector<16x1xf32>
    %191 = vector.broadcast %190 : vector<16x1xf32> to vector<16x16xf32>
    %192 = arith.subf %188, %191 : vector<16x16xf32>
    %193 = math.exp %192 : vector<16x16xf32>
    %cst_85 = arith.constant dense<0.000000e+00> : vector<16xf32>
    %194 = vector.multi_reduction <add>, %193, %cst_85 [1] : vector<16x16xf32> to vector<16xf32>
    %195 = vector.shape_cast %194 : vector<16xf32> to vector<16x1xf32>
    %196 = tpu.reciprocal %195 {approx = true} : vector<16x1xf32> -> vector<16x1xf32>
    %197 = vector.broadcast %196 : vector<16x1xf32> to vector<16x16xf32>
    %198 = arith.mulf %193, %197 : vector<16x16xf32>
    %cst_86 = arith.constant dense<0.000000e+00> : vector<16x8xf32>
    %199 = tpu.matmul %198, %184, %cst_86 {dimension_numbers = #tpu.dot_dimension_numbers<[1], [0], [0], [1], [0, 0, 1, 1], [], []>} : vector<16x16xf32>, vector<16x8xf32>, vector<16x8xf32> -> vector<16x8xf32>
    %200 = vector.extract_strided_slice %181 {offsets = [0, 8], sizes = [16, 8], strides = [1, 1]} : vector<16x96xf32> to vector<16x8xf32>
    %201 = vector.extract_strided_slice %181 {offsets = [0, 40], sizes = [16, 8], strides = [1, 1]} : vector<16x96xf32> to vector<16x8xf32>
    %202 = vector.extract_strided_slice %181 {offsets = [0, 72], sizes = [16, 8], strides = [1, 1]} : vector<16x96xf32> to vector<16x8xf32>
    "tpu.trace_start"() <{level = 10 : i32, message = "qd,kd->qk"}> : () -> ()
    %cst_87 = arith.constant dense<0.000000e+00> : vector<16x16xf32>
    %203 = tpu.matmul %200, %201, %cst_87 {dimension_numbers = #tpu.dot_dimension_numbers<[1], [1], [0], [0], [0, 0, 1, 0], [], []>} : vector<16x8xf32>, vector<16x8xf32>, vector<16x16xf32> -> vector<16x16xf32>
    "tpu.trace_stop"() : () -> ()
    %cst_88 = arith.constant 0.353553385 : f32
    %204 = vector.broadcast %cst_88 : f32 to vector<16x16xf32>
    %205 = arith.mulf %203, %204 : vector<16x16xf32>
    %206 = arith.addf %205, %1 : vector<16x16xf32>
    %cst_89 = arith.constant dense<0xFF800000> : vector<16xf32>
    %207 = vector.multi_reduction <maximumf>, %206, %cst_89 [1] : vector<16x16xf32> to vector<16xf32>
    %208 = vector.shape_cast %207 : vector<16xf32> to vector<16x1xf32>
    %209 = vector.broadcast %208 : vector<16x1xf32> to vector<16x16xf32>
    %210 = arith.subf %206, %209 : vector<16x16xf32>
    %211 = math.exp %210 : vector<16x16xf32>
    %cst_90 = arith.constant dense<0.000000e+00> : vector<16xf32>
    %212 = vector.multi_reduction <add>, %211, %cst_90 [1] : vector<16x16xf32> to vector<16xf32>
    %213 = vector.shape_cast %212 : vector<16xf32> to vector<16x1xf32>
    %214 = tpu.reciprocal %213 {approx = true} : vector<16x1xf32> -> vector<16x1xf32>
    %215 = vector.broadcast %214 : vector<16x1xf32> to vector<16x16xf32>
    %216 = arith.mulf %211, %215 : vector<16x16xf32>
    %cst_91 = arith.constant dense<0.000000e+00> : vector<16x8xf32>
    %217 = tpu.matmul %216, %202, %cst_91 {dimension_numbers = #tpu.dot_dimension_numbers<[1], [0], [0], [1], [0, 0, 1, 1], [], []>} : vector<16x16xf32>, vector<16x8xf32>, vector<16x8xf32> -> vector<16x8xf32>
    %218 = vector.extract_strided_slice %181 {offsets = [0, 16], sizes = [16, 8], strides = [1, 1]} : vector<16x96xf32> to vector<16x8xf32>
    %219 = vector.extract_strided_slice %181 {offsets = [0, 48], sizes = [16, 8], strides = [1, 1]} : vector<16x96xf32> to vector<16x8xf32>
    %220 = vector.extract_strided_slice %181 {offsets = [0, 80], sizes = [16, 8], strides = [1, 1]} : vector<16x96xf32> to vector<16x8xf32>
    "tpu.trace_start"() <{level = 10 : i32, message = "qd,kd->qk"}> : () -> ()
    %cst_92 = arith.constant dense<0.000000e+00> : vector<16x16xf32>
    %221 = tpu.matmul %218, %219, %cst_92 {dimension_numbers = #tpu.dot_dimension_numbers<[1], [1], [0], [0], [0, 0, 1, 0], [], []>} : vector<16x8xf32>, vector<16x8xf32>, vector<16x16xf32> -> vector<16x16xf32>
    "tpu.trace_stop"() : () -> ()
    %cst_93 = arith.constant 0.353553385 : f32
    %222 = vector.broadcast %cst_93 : f32 to vector<16x16xf32>
    %223 = arith.mulf %221, %222 : vector<16x16xf32>
    %224 = arith.addf %223, %1 : vector<16x16xf32>
    %cst_94 = arith.constant dense<0xFF800000> : vector<16xf32>
    %225 = vector.multi_reduction <maximumf>, %224, %cst_94 [1] : vector<16x16xf32> to vector<16xf32>
    %226 = vector.shape_cast %225 : vector<16xf32> to vector<16x1xf32>
    %227 = vector.broadcast %226 : vector<16x1xf32> to vector<16x16xf32>
    %228 = arith.subf %224, %227 : vector<16x16xf32>
    %229 = math.exp %228 : vector<16x16xf32>
    %cst_95 = arith.constant dense<0.000000e+00> : vector<16xf32>
    %230 = vector.multi_reduction <add>, %229, %cst_95 [1] : vector<16x16xf32> to vector<16xf32>
    %231 = vector.shape_cast %230 : vector<16xf32> to vector<16x1xf32>
    %232 = tpu.reciprocal %231 {approx = true} : vector<16x1xf32> -> vector<16x1xf32>
    %233 = vector.broadcast %232 : vector<16x1xf32> to vector<16x16xf32>
    %234 = arith.mulf %229, %233 : vector<16x16xf32>
    %cst_96 = arith.constant dense<0.000000e+00> : vector<16x8xf32>
    %235 = tpu.matmul %234, %220, %cst_96 {dimension_numbers = #tpu.dot_dimension_numbers<[1], [0], [0], [1], [0, 0, 1, 1], [], []>} : vector<16x16xf32>, vector<16x8xf32>, vector<16x8xf32> -> vector<16x8xf32>
    %236 = vector.extract_strided_slice %181 {offsets = [0, 24], sizes = [16, 8], strides = [1, 1]} : vector<16x96xf32> to vector<16x8xf32>
    %237 = vector.extract_strided_slice %181 {offsets = [0, 56], sizes = [16, 8], strides = [1, 1]} : vector<16x96xf32> to vector<16x8xf32>
    %238 = vector.extract_strided_slice %181 {offsets = [0, 88], sizes = [16, 8], strides = [1, 1]} : vector<16x96xf32> to vector<16x8xf32>
    "tpu.trace_start"() <{level = 10 : i32, message = "qd,kd->qk"}> : () -> ()
    %cst_97 = arith.constant dense<0.000000e+00> : vector<16x16xf32>
    %239 = tpu.matmul %236, %237, %cst_97 {dimension_numbers = #tpu.dot_dimension_numbers<[1], [1], [0], [0], [0, 0, 1, 0], [], []>} : vector<16x8xf32>, vector<16x8xf32>, vector<16x16xf32> -> vector<16x16xf32>
    "tpu.trace_stop"() : () -> ()
    %cst_98 = arith.constant 0.353553385 : f32
    %240 = vector.broadcast %cst_98 : f32 to vector<16x16xf32>
    %241 = arith.mulf %239, %240 : vector<16x16xf32>
    %242 = arith.addf %241, %1 : vector<16x16xf32>
    %cst_99 = arith.constant dense<0xFF800000> : vector<16xf32>
    %243 = vector.multi_reduction <maximumf>, %242, %cst_99 [1] : vector<16x16xf32> to vector<16xf32>
    %244 = vector.shape_cast %243 : vector<16xf32> to vector<16x1xf32>
    %245 = vector.broadcast %244 : vector<16x1xf32> to vector<16x16xf32>
    %246 = arith.subf %242, %245 : vector<16x16xf32>
    %247 = math.exp %246 : vector<16x16xf32>
    %cst_100 = arith.constant dense<0.000000e+00> : vector<16xf32>
    %248 = vector.multi_reduction <add>, %247, %cst_100 [1] : vector<16x16xf32> to vector<16xf32>
    %249 = vector.shape_cast %248 : vector<16xf32> to vector<16x1xf32>
    %250 = tpu.reciprocal %249 {approx = true} : vector<16x1xf32> -> vector<16x1xf32>
    %251 = vector.broadcast %250 : vector<16x1xf32> to vector<16x16xf32>
    %252 = arith.mulf %247, %251 : vector<16x16xf32>
    %cst_101 = arith.constant dense<0.000000e+00> : vector<16x8xf32>
    %253 = tpu.matmul %252, %238, %cst_101 {dimension_numbers = #tpu.dot_dimension_numbers<[1], [0], [0], [1], [0, 0, 1, 1], [], []>} : vector<16x16xf32>, vector<16x8xf32>, vector<16x8xf32> -> vector<16x8xf32>
    %254 = tpu.concatenate %199, %217, %235, %253 in 1 : vector<16x8xf32>, vector<16x8xf32>, vector<16x8xf32>, vector<16x8xf32> -> vector<16x32xf32>
    %255 = arith.truncf %254 : vector<16x32xf32> to vector<16x32xbf16>
    %c1_102 = arith.constant 1 : index
    %c0_103 = arith.constant 0 : index
    %c0_104 = arith.constant 0 : index
    %256 = vector.load %arg4[%c1_102, %c0_103, %c0_104] : memref<2x32x32xbf16, #tpu.memory_space<vmem>>, vector<1x32x32xbf16>
    %257 = vector.shape_cast %256 : vector<1x32x32xbf16> to vector<32x32xbf16>
    %cst_105 = arith.constant dense<0.000000e+00> : vector<16x32xf32>
    %258 = tpu.matmul %255, %257, %cst_105 {dimension_numbers = #tpu.dot_dimension_numbers<[1], [0], [0], [1], [0, 0, 1, 1], [], []>} : vector<16x32xbf16>, vector<32x32xbf16>, vector<16x32xf32> -> vector<16x32xf32>
    %c1_106 = arith.constant 1 : index
    %c0_107 = arith.constant 0 : index
    %c0_108 = arith.constant 0 : index
    %259 = vector.load %arg5[%c1_106, %c0_107, %c0_108] : memref<2x1x32xf32, #tpu.memory_space<vmem>>, vector<1x1x32xf32>
    %260 = vector.shape_cast %259 : vector<1x1x32xf32> to vector<1x32xf32>
    %261 = vector.broadcast %260 : vector<1x32xf32> to vector<16x32xf32>
    %262 = arith.addf %258, %261 : vector<16x32xf32>
    %263 = arith.addf %173, %262 : vector<16x32xf32>
    %c1_109 = arith.constant 1 : index
    %c0_110 = arith.constant 0 : index
    %c0_111 = arith.constant 0 : index
    %264 = vector.load %arg6[%c1_109, %c0_110, %c0_111] : memref<2x1x32xf32, #tpu.memory_space<vmem>>, vector<1x1x32xf32>
    %265 = vector.shape_cast %264 : vector<1x1x32xf32> to vector<1x32xf32>
    %c1_112 = arith.constant 1 : index
    %c0_113 = arith.constant 0 : index
    %c0_114 = arith.constant 0 : index
    %266 = vector.load %arg7[%c1_112, %c0_113, %c0_114] : memref<2x1x32xf32, #tpu.memory_space<vmem>>, vector<1x1x32xf32>
    %267 = vector.shape_cast %266 : vector<1x1x32xf32> to vector<1x32xf32>
    %cst_115 = arith.constant dense<0.000000e+00> : vector<16xf32>
    %268 = vector.multi_reduction <add>, %263, %cst_115 [1] : vector<16x32xf32> to vector<16xf32>
    %269 = vector.shape_cast %268 : vector<16xf32> to vector<16x1xf32>
    %cst_116 = arith.constant 3.200000e+01 : f32
    %270 = vector.broadcast %cst_116 : f32 to vector<16x1xf32>
    %271 = arith.divf %269, %270 : vector<16x1xf32>
    %272 = vector.broadcast %271 : vector<16x1xf32> to vector<16x32xf32>
    %273 = arith.subf %263, %272 : vector<16x32xf32>
    %274 = arith.mulf %273, %273 : vector<16x32xf32>
    %cst_117 = arith.constant dense<0.000000e+00> : vector<16xf32>
    %275 = vector.multi_reduction <add>, %274, %cst_117 [1] : vector<16x32xf32> to vector<16xf32>
    %276 = vector.shape_cast %275 : vector<16xf32> to vector<16x1xf32>
    %cst_118 = arith.constant 3.200000e+01 : f32
    %277 = vector.broadcast %cst_118 : f32 to vector<16x1xf32>
    %278 = arith.divf %276, %277 : vector<16x1xf32>
    %279 = vector.broadcast %271 : vector<16x1xf32> to vector<16x32xf32>
    %280 = arith.subf %263, %279 : vector<16x32xf32>
    %cst_119 = arith.constant 9.99999996E-13 : f32
    %281 = vector.broadcast %cst_119 : f32 to vector<16x1xf32>
    %282 = arith.addf %278, %281 : vector<16x1xf32>
    %283 = math.rsqrt %282 : vector<16x1xf32>
    %284 = vector.broadcast %283 : vector<16x1xf32> to vector<16x32xf32>
    %285 = arith.mulf %280, %284 : vector<16x32xf32>
    %286 = vector.broadcast %265 : vector<1x32xf32> to vector<16x32xf32>
    %287 = arith.mulf %285, %286 : vector<16x32xf32>
    %288 = vector.broadcast %267 : vector<1x32xf32> to vector<16x32xf32>
    %289 = arith.addf %287, %288 : vector<16x32xf32>
    %290 = arith.truncf %289 : vector<16x32xf32> to vector<16x32xbf16>
    %c1_120 = arith.constant 1 : index
    %c0_121 = arith.constant 0 : index
    %c0_122 = arith.constant 0 : index
    %291 = vector.load %arg8[%c1_120, %c0_121, %c0_122] : memref<2x32x64xbf16, #tpu.memory_space<vmem>>, vector<1x32x64xbf16>
    %292 = vector.shape_cast %291 : vector<1x32x64xbf16> to vector<32x64xbf16>
    %cst_123 = arith.constant dense<0.000000e+00> : vector<16x64xf32>
    %293 = tpu.matmul %290, %292, %cst_123 {dimension_numbers = #tpu.dot_dimension_numbers<[1], [0], [0], [1], [0, 0, 1, 1], [], []>} : vector<16x32xbf16>, vector<32x64xbf16>, vector<16x64xf32> -> vector<16x64xf32>
    %c1_124 = arith.constant 1 : index
    %c0_125 = arith.constant 0 : index
    %c0_126 = arith.constant 0 : index
    %294 = vector.load %arg9[%c1_124, %c0_125, %c0_126] : memref<2x1x64xf32, #tpu.memory_space<vmem>>, vector<1x1x64xf32>
    %295 = vector.shape_cast %294 : vector<1x1x64xf32> to vector<1x64xf32>
    %296 = vector.broadcast %295 : vector<1x64xf32> to vector<16x64xf32>
    %297 = arith.addf %293, %296 : vector<16x64xf32>
    %298 = arith.mulf %297, %297 : vector<16x64xf32>
    %299 = arith.mulf %297, %298 : vector<16x64xf32>
    %cst_127 = arith.constant 4.471500e-02 : f32
    %300 = vector.broadcast %cst_127 : f32 to vector<16x64xf32>
    %301 = arith.mulf %300, %299 : vector<16x64xf32>
    %302 = arith.addf %297, %301 : vector<16x64xf32>
    %cst_128 = arith.constant 0.797884583 : f32
    %303 = vector.broadcast %cst_128 : f32 to vector<16x64xf32>
    %304 = arith.mulf %303, %302 : vector<16x64xf32>
    %305 = math.tanh %304 : vector<16x64xf32>
    %cst_129 = arith.constant 1.000000e+00 : f32
    %306 = vector.broadcast %cst_129 : f32 to vector<16x64xf32>
    %307 = arith.addf %306, %305 : vector<16x64xf32>
    %cst_130 = arith.constant 5.000000e-01 : f32
    %308 = vector.broadcast %cst_130 : f32 to vector<16x64xf32>
    %309 = arith.mulf %308, %307 : vector<16x64xf32>
    %310 = arith.mulf %297, %309 : vector<16x64xf32>
    %311 = arith.truncf %310 : vector<16x64xf32> to vector<16x64xbf16>
    %c1_131 = arith.constant 1 : index
    %c0_132 = arith.constant 0 : index
    %c0_133 = arith.constant 0 : index
    %312 = vector.load %arg10[%c1_131, %c0_132, %c0_133] : memref<2x64x32xbf16, #tpu.memory_space<vmem>>, vector<1x64x32xbf16>
    %313 = vector.shape_cast %312 : vector<1x64x32xbf16> to vector<64x32xbf16>
    %cst_134 = arith.constant dense<0.000000e+00> : vector<16x32xf32>
    %314 = tpu.matmul %311, %313, %cst_134 {dimension_numbers = #tpu.dot_dimension_numbers<[1], [0], [0], [1], [0, 0, 1, 1], [], []>} : vector<16x64xbf16>, vector<64x32xbf16>, vector<16x32xf32> -> vector<16x32xf32>
    %c1_135 = arith.constant 1 : index
    %c0_136 = arith.constant 0 : index
    %c0_137 = arith.constant 0 : index
    %315 = vector.load %arg11[%c1_135, %c0_136, %c0_137] : memref<2x1x32xf32, #tpu.memory_space<vmem>>, vector<1x1x32xf32>
    %316 = vector.shape_cast %315 : vector<1x1x32xf32> to vector<1x32xf32>
    %317 = vector.broadcast %316 : vector<1x32xf32> to vector<16x32xf32>
    %318 = arith.addf %314, %317 : vector<16x32xf32>
    %319 = arith.addf %289, %318 : vector<16x32xf32>
    %c1_138 = arith.constant 1 : index
    %c0_139 = arith.constant 0 : index
    %c0_140 = arith.constant 0 : index
    %320 = vector.load %arg12[%c1_138, %c0_139, %c0_140] : memref<2x1x32xf32, #tpu.memory_space<vmem>>, vector<1x1x32xf32>
    %321 = vector.shape_cast %320 : vector<1x1x32xf32> to vector<1x32xf32>
    %c1_141 = arith.constant 1 : index
    %c0_142 = arith.constant 0 : index
    %c0_143 = arith.constant 0 : index
    %322 = vector.load %arg13[%c1_141, %c0_142, %c0_143] : memref<2x1x32xf32, #tpu.memory_space<vmem>>, vector<1x1x32xf32>
    %323 = vector.shape_cast %322 : vector<1x1x32xf32> to vector<1x32xf32>
    %cst_144 = arith.constant dense<0.000000e+00> : vector<16xf32>
    %324 = vector.multi_reduction <add>, %319, %cst_144 [1] : vector<16x32xf32> to vector<16xf32>
    %325 = vector.shape_cast %324 : vector<16xf32> to vector<16x1xf32>
    %cst_145 = arith.constant 3.200000e+01 : f32
    %326 = vector.broadcast %cst_145 : f32 to vector<16x1xf32>
    %327 = arith.divf %325, %326 : vector<16x1xf32>
    %328 = vector.broadcast %327 : vector<16x1xf32> to vector<16x32xf32>
    %329 = arith.subf %319, %328 : vector<16x32xf32>
    %330 = arith.mulf %329, %329 : vector<16x32xf32>
    %cst_146 = arith.constant dense<0.000000e+00> : vector<16xf32>
    %331 = vector.multi_reduction <add>, %330, %cst_146 [1] : vector<16x32xf32> to vector<16xf32>
    %332 = vector.shape_cast %331 : vector<16xf32> to vector<16x1xf32>
    %cst_147 = arith.constant 3.200000e+01 : f32
    %333 = vector.broadcast %cst_147 : f32 to vector<16x1xf32>
    %334 = arith.divf %332, %333 : vector<16x1xf32>
    %335 = vector.broadcast %327 : vector<16x1xf32> to vector<16x32xf32>
    %336 = arith.subf %319, %335 : vector<16x32xf32>
    %cst_148 = arith.constant 9.99999996E-13 : f32
    %337 = vector.broadcast %cst_148 : f32 to vector<16x1xf32>
    %338 = arith.addf %334, %337 : vector<16x1xf32>
    %339 = math.rsqrt %338 : vector<16x1xf32>
    %340 = vector.broadcast %339 : vector<16x1xf32> to vector<16x32xf32>
    %341 = arith.mulf %336, %340 : vector<16x32xf32>
    %342 = vector.broadcast %321 : vector<1x32xf32> to vector<16x32xf32>
    %343 = arith.mulf %341, %342 : vector<16x32xf32>
    %344 = vector.broadcast %323 : vector<1x32xf32> to vector<16x32xf32>
    %345 = arith.addf %343, %344 : vector<16x32xf32>
    %346 = vector.extract_strided_slice %345 {offsets = [7, 0], sizes = [1, 32], strides = [1, 1]} : vector<16x32xf32> to vector<1x32xf32>
    %347 = vector.extract_strided_slice %345 {offsets = [15, 0], sizes = [1, 32], strides = [1, 1]} : vector<16x32xf32> to vector<1x32xf32>
    %348 = tpu.concatenate %346, %347 in 0 : vector<1x32xf32>, vector<1x32xf32> -> vector<2x32xf32>
    %349 = arith.truncf %348 : vector<2x32xf32> to vector<2x32xbf16>
    %c0_149 = arith.constant 0 : index
    %c0_150 = arith.constant 0 : index
    %350 = vector.load %arg14[%c0_149, %c0_150] : memref<32x128xbf16, #tpu.memory_space<vmem>>, vector<32x128xbf16>
    %cst_151 = arith.constant dense<0.000000e+00> : vector<2x128xf32>
    %351 = tpu.matmul %349, %350, %cst_151 {dimension_numbers = #tpu.dot_dimension_numbers<[1], [0], [0], [1], [0, 0, 1, 1], [], []>} : vector<2x32xbf16>, vector<32x128xbf16>, vector<2x128xf32> -> vector<2x128xf32>
    %c0_152 = arith.constant 0 : index
    %c0_153 = arith.constant 0 : index
    %352 = vector.load %arg15[%c0_152, %c0_153] : memref<1x128xf32, #tpu.memory_space<vmem>>, vector<1x128xf32>
    %353 = vector.broadcast %352 : vector<1x128xf32> to vector<2x128xf32>
    %354 = arith.addf %351, %353 : vector<2x128xf32>
    %c0_154 = arith.constant 0 : index
    %c0_155 = arith.constant 0 : index
    %355 = vector.load %arg16[%c0_154, %c0_155] : memref<2x128xf32, #tpu.memory_space<vmem>>, vector<2x128xf32>
    tpu.vector_store %arg16[%c0_154, %c0_155], %354 {strides = array<i32>} : memref<2x128xf32, #tpu.memory_space<vmem>>, vector<2x128xf32>,
    return
  }
}

</mosaic_0001>

<bundles_post_ra>
// kernel: xlnet_classify.1
= control target key start
LH: loop header
LB: loop body
LE: loop exit
PB: predicated region body
PF: predicated region fallthrough
CT: control target
= control target key end

     0   :  { %s3965_s0 = inlined_call_operand.vmem [shape: f32[16,32], index: 0, kind: input, shape index: {}]   ;;  %s3966_s1 = inlined_call_operand.vmem [shape: f32[16,16], index: 1, kind: input, shape index: {}]   ;;  %s3967_s2 = inlined_call_operand.vmem [shape: bf16[2,32,96], index: 2, kind: input, shape index: {}]   ;;  %s3968_s3 = inlined_call_operand.vmem [shape: f32[2,1,96], index: 3, kind: input, shape index: {}]   ;;  %s3969_s4 = inlined_call_operand.vmem [shape: bf16[2,32,32], index: 4, kind: input, shape index: {}]   ;;  %s3970_s5 = inlined_call_operand.vmem [shape: f32[2,1,32], index: 5, kind: input, shape index: {}]   ;;  %s3971_s6 = inlined_call_operand.vmem [shape: f32[2,1,32], index: 6, kind: input, shape index: {}]   ;;  %s3972_s7 = inlined_call_operand.vmem [shape: f32[2,1,32], index: 7, kind: input, shape index: {}]   ;;  %s3973_s8 = inlined_call_operand.vmem [shape: bf16[2,32,64], index: 8, kind: input, shape index: {}]   ;;  %s3974_s9 = inlined_call_operand.vmem [shape: f32[2,1,64], index: 9, kind: input, shape index: {}]   ;;  %s3975_s10 = inlined_call_operand.vmem [shape: bf16[2,64,32], index: 10, kind: input, shape index: {}]   ;;  %s3976_s11 = inlined_call_operand.vmem [shape: f32[2,1,32], index: 11, kind: input, shape index: {}]   ;;  %s3977_s12 = inlined_call_operand.vmem [shape: f32[2,1,32], index: 12, kind: input, shape index: {}]   ;;  %s3978_s13 = inlined_call_operand.vmem [shape: f32[2,1,32], index: 13, kind: input, shape index: {}]   ;;  %s3979_s14 = inlined_call_operand.vmem [shape: bf16[32,128], index: 14, kind: input, shape index: {}]   ;;  %s3980_s15 = inlined_call_operand.vmem [shape: f32[1,128], index: 15, kind: input, shape index: {}]   ;;  %s3981_s16 = inlined_call_operand.hbm [shape: f32[2,128], index: 16, kind: output, shape index: {}]  }
   0x1   :  { %3991 = sst [smem:[#allocation5_spill]] %s3965_s0 }
   0x2   :  { %v3269_v0 = vld [vmem:[%s3967_s2] sm:$0xff]   ;;  %v3405_v1 = vmov 0.0   ;;  %v3270_v2 = vld [vmem:[%s3967_s2 + $0x8] sm:$0xff]   ;;  %vm3406_vm0 = vmmov 0   ;;  %s3992_s27 = sld [smem:[#allocation5_spill]]  ;;  %vm83_vm1 = vcmask 261120  }
   0x3   :  { %2870 = vmatprep.subr.bf16.mxu0 %v3405_v1  ;;  %2874 = vmatprep.mubr.msk.bf16.mxu0 %vm3406_vm0, %v3405_v1 }
   0x4   :  { %2871 = vmatpush3.bf16.msra.mxu0 %v3269_v0 }
   0x5   :  { %2872 = vmatprep.subr.bf16.mxu0 %v3405_v1 }
   0x8   :  { %v3519_v3 = vld [vmem:[%s3992_s27] sm:$0xff]  ;;  %v3524_v4 = vld [vmem:[%s3992_s27 + $0x8] sm:$0xff]  ;;  %2873 = vmatpush3.bf16.msra.mxu0 %v3270_v2 }
   0x9   :  { %v59_v5 = vpack.c.bf16 %v3524_v4, %v3519_v3 }
   0xb   :  { %2875 = vmatmul.mubr.msk.bf16.vlgmr.msra.gmra.mrb[0].mxu0 %vm83_vm1, %v59_v5 }
   0xc   :  { %21 = vsyncpa [#allocation3], 0  ;;  %v2651_v6 = vld [vmem:[%s3968_s3] ss:$0 sm:$0xff]  ;;  %vm134_vm2 = vcmask 64512   ;;  %s3407_s17 = smov 120  }
   0xd   :  { %s3408_s18 = smov 80   ;;  %s3409_s19 = smov 96   ;;  %vm3560_vm3 = vmpackc.low %vm134_vm2, %vm134_vm2  ;;  %v3587_v32 = vld [vmem:[%s3966_s1 + $0x8] sm:$0xff]  ;;  %v3592_v35 = vld [vmem:[%s3966_s1] sm:$0xff]  ;;  %vm222_vm4 = vcmask 130048   ;;  %vm972_vm5 = vcmask 195584  }
   0xe   :  { %s3410_s20 = smov 112   ;;  %s3411_s21 = smov 88   ;;  %vm1216_vm6 = vcmask 523264   ;;  %vm2567_vm7 = vcmask 1040384  }
   0xf   :  { %s3989_s26 = smov 56   ;;  %s3413_s27 = smov 64  }
  0x10   :  { %s3414_s28 = smov 48   ;;  %s3990_s29 = smov 72  }
  0x11   :  { %s3987_s30 = smov 104   ;;  %s3983_s0 = smov 8  }
  0x12   :  { %s3984_s22 = smov 16   ;;  %s3985_s23 = smov 40  }
  0x13   :  { %s3999_s25 = smov 16  }
  0xde   :  { %v121_v7 = vpop.f32.mrb[0].mxu0 }
  0xdf   :  { %v3533_v8 = vadd.f32 %v2651_v6, %v121_v7  ;;  %v2876_v9 = vpop.f32.mrb[1].mxu0 }
  0xe0   :  { %v124_v10 = vpop.f32.mrb[2].mxu0 }
  0xe1   :  { %v3535_v11 = vadd.f32 %v2651_v6, %v124_v10  ;;  %332 = vrot.lane.b32.xlu1 %v3533_v8, %s3407_s17  ;;  %v2877_v12 = vpop.f32.mrb[3].mxu0  ;;  %2882 = vmatprep.mubr.msk.f32.mxu1 %vm134_vm2, %v3533_v8 }
  0xe3   :  { %v3543_v13 = vpack.i.bf16 %v3535_v11, %v3533_v8 }
  0xe5   :  { %3170 = vrot.lane.b32.xlu1 %v3543_v13, %s3408_s18  ;;  %3160 = vrot.lane.b32.xlu0 %v3543_v13, %s3409_s19 }
  0xe9   :  { %536 = vrot.lane.b32.xlu1 %v3533_v8, %s3410_s20  ;;  %3165 = vrot.lane.b32.xlu0 %v3543_v13, %s3411_s21 }
  0xed   :  { %334 = vrot.lane.b32.xlu0 %v3535_v11, %s3407_s17 }
  0xf1   :  { %538 = vrot.lane.b32.xlu0 %v3535_v11, %s3410_s20 }
 0x153   :  { %v333_v14 = vpop.permute.xlu1 %332 }
 0x154   :  { %2896 = vmatprep.mubr.msk.f32.mxu0 %vm134_vm2, %v333_v14 }
 0x157   :  { %v3161_v15 = vpop.permute.xlu0 %3160  ;;  %v3171_v18 = vpop.permute.xlu1 %3170 }
 0x158   :  { %v3163_v16 = vunpack.i.h.bf16 %v3161_v15  ;;  %v3162_v17 = vunpack.i.l.bf16 %v3161_v15  ;;  %v3173_v22 = vunpack.i.h.bf16 %v3171_v18  ;;  %v3172_v23 = vunpack.i.l.bf16 %v3171_v18 }
 0x15a   :  { %v3062_v20 = vpack.c.bf16 %v3163_v16, %v3162_v17  ;;  %v3082_v27 = vpack.c.bf16 %v3173_v22, %v3172_v23 }
 0x15b   :  { %v3166_v21 = vpop.permute.xlu0 %3165  ;;  %v537_v29 = vpop.permute.xlu1 %536 }
 0x15c   :  { %v3168_v24 = vunpack.i.h.bf16 %v3166_v21  ;;  %v3167_v25 = vunpack.i.l.bf16 %v3166_v21  ;;  %3064 = vmatprep.subr.msk.bf16.mxu1 %vm3560_vm3, %v3062_v20 }
 0x15d   :  { %3067 = vmatpush3.bf16.xpose.msk.msra.mxu1 %vm3560_vm3, %v3062_v20 }
 0x15e   :  { %v3072_v26 = vpack.c.bf16 %v3168_v24, %v3167_v25 }
 0x15f   :  { %v335_v28 = vpop.permute.xlu0 %334 }
 0x160   :  { %3074 = vmatprep.subr.msk.bf16.mxu0 %vm3560_vm3, %v3072_v26 }
 0x161   :  { %3077 = vmatpush3.bf16.xpose.msk.msra.mxu0 %vm3560_vm3, %v3072_v26 }
 0x162   :  { %3084 = vmatprep.subr.msk.bf16.mxu0 %vm3560_vm3, %v3082_v27 }
 0x163   :  { %v539_v30 = vpop.permute.xlu0 %538 }
 0x164   :  { %2883 = vmatmul.mubr.msk.f32.vlgmr.msra.gmra.mrb[0].mxu1 %vm134_vm2, %v3535_v11 }
 0x168   :  { %2897 = vmatmul.mubr.msk.f32.vlgmr.msra.gmra.mrb[4].mxu0 %vm134_vm2, %v335_v28 }
 0x169   :  { %3087 = vmatpush3.bf16.xpose.msk.msra.mxu0 %vm3560_vm3, %v3082_v27  ;;  %2910 = vmatprep.mubr.msk.f32.mxu0 %vm134_vm2, %v537_v29 }
 0x16a   :  { %2934 = vmatprep.subr.bf16.mxu0 %v3405_v1 }
 0x170   :  { %2911 = vmatmul.mubr.msk.f32.vlgmr.msra.gmra.mrb[6].mxu0 %vm134_vm2, %v539_v30 }
 0x171   :  { %2938 = vmatprep.mubr.msk.bf16.mxu0 %vm3406_vm0, %v3405_v1 }
 0x237   :  { %v2884_v31 = vpop.f32.mrb[0].mxu1 }
 0x238   :  { %v219_v33 = vmul.f32 0.35355338, %v2884_v31  ;;  %v209_v34 = vpop.f32.mrb[1].mxu1 }
 0x239   :  { %v218_v36 = vmul.f32 0.35355338, %v209_v34 }
 0x23a   :  { %v221_v37 = vadd.f32 %v219_v33, %v3587_v32 }
 0x23b   :  { %v2898_v38 = vpop.f32.mrb[4].mxu0  ;;  %v220_v39 = vadd.f32 %v218_v36, %v3592_v35 }
 0x23c   :  { %v424_v40 = vmul.f32 0.35355338, %v2898_v38  ;;  %v414_v41 = vpop.f32.mrb[5].mxu0  ;;  %v226_v42 = vsel %vm222_vm4, %v221_v37, -inf }
 0x23d   :  { %v423_v43 = vmul.f32 0.35355338, %v414_v41  ;;  %227 = vmax.xlane.f32.xlu0 %v226_v42  ;;  %v223_v44 = vsel %vm222_vm4, %v220_v39, -inf }
 0x23e   :  { %224 = vmax.xlane.f32.xlu1 %v223_v44  ;;  %v426_v45 = vadd.f32 %v424_v40, %v3587_v32 }
 0x23f   :  { %v425_v46 = vadd.f32 %v423_v43, %v3592_v35 }
 0x240   :  { %v430_v47 = vsel %vm222_vm4, %v426_v45, -inf }
 0x241   :  { %v427_v48 = vsel %vm222_vm4, %v425_v46, -inf }
 0x242   :  { %431 = vmax.xlane.f32.xlu1 %v430_v47  ;;  %428 = vmax.xlane.f32.xlu0 %v427_v48 }
 0x243   :  { %v2912_v49 = vpop.f32.mrb[6].mxu0 }
 0x244   :  { %v628_v50 = vmul.f32 0.35355338, %v2912_v49  ;;  %v618_v51 = vpop.f32.mrb[7].mxu0 }
 0x245   :  { %v627_v52 = vmul.f32 0.35355338, %v618_v51 }
 0x246   :  { %v3603_v53 = vadd.f32 %v628_v50, %v3587_v32 }
 0x247   :  { %v629_v54 = vadd.f32 %v627_v52, %v3592_v35 }
 0x248   :  { %v634_v55 = vsel %vm222_vm4, %v3603_v53, -inf }
 0x249   :  { %635 = vmax.xlane.f32.xlu1 %v634_v55  ;;  %v631_v56 = vsel %vm222_vm4, %v629_v54, -inf }
 0x24a   :  { %632 = vmax.xlane.f32.xlu0 %v631_v56 }
 0x25a   :  { %3180 = vrot.lane.b32.xlu1 %v3543_v13, %s3989_s26 }
 0x260   :  { %3175 = vrot.lane.b32.xlu0 %v3543_v13, %s3413_s27 }
 0x2ca   :  { %v228_v57 = vpop.xlane.xlu0 %227 }
 0x2cb   :  { %v230_v58 = vsub.f32 %v221_v37, %v228_v57  ;;  %v225_v59 = vpop.xlane.xlu1 %224 }
 0x2cc   :  { %v229_v60 = vsub.f32 %v220_v39, %v225_v59 }
 0x2cd   :  { %v233_v61 = vmul.f32 1.442695, %v230_v58 }
 0x2ce   :  { %v231_v62 = vmul.f32 1.442695, %v229_v60 }
 0x2cf   :  { %3291 = vpow2.f32 %v233_v61  ;;  %v432_v63 = vpop.xlane.xlu1 %431  ;;  %v429_v0 = vpop.xlane.xlu0 %428 }
 0x2d0   :  { %3293 = vpow2.f32 %v231_v62  ;;  %v434_v2 = vsub.f32 %v426_v45, %v432_v63  ;;  %v433_v5 = vsub.f32 %v425_v46, %v429_v0 }
 0x2d2   :  { %v437_v6 = vmul.f32 1.442695, %v434_v2  ;;  %v435_v7 = vmul.f32 1.442695, %v433_v5 }
 0x2d4   :  { %3295 = vpow2.f32 %v437_v6 }
 0x2d5   :  { %3297 = vpow2.f32 %v435_v7 }
 0x2d6   :  { %v636_v9 = vpop.xlane.xlu1 %635 }
 0x2d7   :  { %v633_v10 = vpop.xlane.xlu0 %632  ;;  %v638_v36 = vsub.f32 %v3603_v53, %v636_v9 }
 0x2d8   :  { %v637_v12 = vsub.f32 %v629_v54, %v633_v10 }
 0x2d9   :  { %v3292_v14 = vpop.eup %3291  ;;  %v641_v37 = vmul.f32 1.442695, %v638_v36 }
 0x2da   :  { %v3294_v15 = vpop.eup %3293  ;;  %v639_v16 = vmul.f32 1.442695, %v637_v12  ;;  %v3181_v17 = vpop.permute.xlu1 %3180  ;;  %v238_v18 = vsel %vm222_vm4, %v3292_v14, 0.0 }
 0x2db   :  { %v3183_v20 = vunpack.i.h.bf16 %v3181_v17  ;;  %239 = vadd.xlane.f32.xlu1 %v238_v18  ;;  %v3176_v21 = vpop.permute.xlu0 %3175  ;;  %v235_v22 = vsel %vm222_vm4, %v3294_v15, 0.0  ;;  %v3182_v23 = vunpack.i.l.bf16 %v3181_v17 }
 0x2dc   :  { %3299 = vpow2.f32 %v639_v16  ;;  %v3178_v24 = vunpack.i.h.bf16 %v3176_v21  ;;  %v3177_v25 = vunpack.i.l.bf16 %v3176_v21  ;;  %236 = vadd.xlane.f32.xlu0 %v235_v22 }
 0x2dd   :  { %v3078_v30 = vpack.c.bf16 %v3183_v20, %v3182_v23  ;;  %3301 = vpow2.f32 %v641_v37 }
 0x2de   :  { %v3296_v26 = vpop.eup %3295  ;;  %v3068_v27 = vpack.c.bf16 %v3178_v24, %v3177_v25 }
 0x2df   :  { %v3298_v28 = vpop.eup %3297  ;;  %v442_v29 = vsel %vm222_vm4, %v3296_v26, 0.0 }
 0x2e0   :  { %443 = vadd.xlane.f32.xlu1 %v442_v29  ;;  %v439_v31 = vsel %vm222_vm4, %v3298_v28, 0.0  ;;  %3069 = vmatprep.subr.bf16.mxu1 %v3068_v27 }
 0x2e1   :  { %440 = vadd.xlane.f32.xlu0 %v439_v31  ;;  %3071 = vmatpush3.bf16.msra.mxu1 %v3068_v27 }
 0x2e2   :  { %3079 = vmatprep.subr.bf16.mxu1 %v3078_v30 }
 0x2e6   :  { %v3300_v33 = vpop.eup %3299 }
 0x2e7   :  { %v643_v34 = vsel %vm222_vm4, %v3300_v33, 0.0  ;;  %v3302_v38 = vpop.eup %3301 }
 0x2e8   :  { %644 = vadd.xlane.f32.xlu0 %v643_v34  ;;  %v646_v39 = vsel %vm222_vm4, %v3302_v38, 0.0 }
 0x2f1   :  { %3185 = vrot.lane.b32.xlu1 %v3543_v13, %s3414_s28 }
 0x2fe   :  { %3190 = vrot.lane.b32.xlu0 %v3543_v13, %s3990_s29 }
 0x302   :  { %742 = vrot.lane.b32.xlu0 %v3535_v11, %s3987_s30 }
 0x315   :  { %647 = vadd.xlane.f32.xlu1 %v646_v39 }
 0x326   :  { %740 = vrot.lane.b32.xlu1 %v3533_v8, %s3987_s30  ;;  %s3421_s30 = smov [#allocation2]  }
 0x368   :  { %v240_v40 = vpop.xlane.xlu1 %239 }
 0x369   :  { %3303 = vrcp.f32 %v240_v40  ;;  %v237_v41 = vpop.xlane.xlu0 %236 }
 0x36a   :  { %3305 = vrcp.f32 %v237_v41 }
 0x36d   :  { %v444_v42 = vpop.xlane.xlu1 %443 }
 0x36e   :  { %3307 = vrcp.f32 %v444_v42  ;;  %v441_v43 = vpop.xlane.xlu0 %440 }
 0x36f   :  { %3309 = vrcp.f32 %v441_v43 }
 0x371   :  { %v3186_v44 = vpop.permute.xlu1 %3185 }
 0x372   :  { %v3188_v46 = vunpack.i.h.bf16 %v3186_v44  ;;  %v3187_v47 = vunpack.i.l.bf16 %v3186_v44 }
 0x373   :  { %v3304_v45 = vpop.eup %3303 }
 0x374   :  { %v3306_v11 = vpop.eup %3305  ;;  %v244_v50 = vmul.f32 %v3304_v45, %v3292_v14  ;;  %v3088_v51 = vpack.c.bf16 %v3188_v46, %v3187_v47  ;;  %v3272_v46 = vld [vmem:[%s3969_s4 + $0x8] sm:$0xff]  }
 0x375   :  { %v645_v48 = vpop.xlane.xlu0 %644  ;;  %v243_v49 = vmul.f32 %v3306_v11, %v3294_v15 }
 0x376   :  { %3311 = vrcp.f32 %v645_v48 }
 0x377   :  { %2889 = vmatprep.mubr.msk.f32.mxu1 %vm222_vm4, %v243_v49 }
 0x378   :  { %v3308_v8 = vpop.eup %3307  ;;  %2890 = vmatmul.mubr.msk.f32.vlgmr.msra.gmra.mrb[2].mxu1 %vm222_vm4, %v244_v50 }
 0x379   :  { %v3310_v52 = vpop.eup %3309  ;;  %v448_v53 = vmul.f32 %v3308_v8, %v3296_v26  ;;  %3081 = vmatpush3.bf16.msra.mxu1 %v3078_v30  ;;  %v3191_v54 = vpop.permute.xlu0 %3190 }
 0x37a   :  { %v3193_v55 = vunpack.i.h.bf16 %v3191_v54  ;;  %v3192_v56 = vunpack.i.l.bf16 %v3191_v54  ;;  %3089 = vmatprep.subr.bf16.mxu1 %v3088_v51  ;;  %v447_v57 = vmul.f32 %v3310_v52, %v3298_v28 }
 0x37c   :  { %v3092_v58 = vpack.c.bf16 %v3193_v55, %v3192_v56  ;;  %2903 = vmatprep.mubr.msk.f32.mxu1 %vm222_vm4, %v447_v57 }
 0x37d   :  { %2904 = vmatmul.mubr.msk.f32.vlgmr.msra.gmra.mrb[4].mxu1 %vm222_vm4, %v448_v53  ;;  %v743_v2 = vpop.permute.xlu0 %742 }
 0x37e   :  { %3091 = vmatpush3.bf16.msra.mxu1 %v3088_v51 }
 0x37f   :  { %3094 = vmatprep.subr.msk.bf16.mxu1 %vm3560_vm3, %v3092_v58 }
 0x380   :  { %v3312_v59 = vpop.eup %3311 }
 0x381   :  { %v651_v60 = vmul.f32 %v3312_v59, %v3300_v33 }
 0x383   :  { %2917 = vmatprep.mubr.msk.f32.mxu1 %vm222_vm4, %v651_v60 }
 0x3a2   :  { %v648_v61 = vpop.xlane.xlu1 %647 }
 0x3a3   :  { %3313 = vrcp.f32 %v648_v61 }
 0x3a6   :  { %v741_v0 = vpop.permute.xlu1 %740 }
 0x3ad   :  { %v3314_v62 = vpop.eup %3313 }
 0x3ae   :  { %v652_v63 = vmul.f32 %v3314_v62, %v3302_v38 }
 0x3b0   :  { %2918 = vmatmul.mubr.msk.f32.vlgmr.msra.gmra.mrb[6].mxu1 %vm222_vm4, %v652_v63 }
 0x3b1   :  { %3097 = vmatpush3.bf16.xpose.msk.msra.mxu1 %vm3560_vm3, %v3092_v58  ;;  %2924 = vmatprep.mubr.msk.f32.mxu1 %vm134_vm2, %v741_v0 }
 0x3b8   :  { %2925 = vmatmul.mubr.msk.f32.vlgmr.msra.gmra.mrb[8].mxu1 %vm134_vm2, %v743_v2  ;;  %v2679_v2 = vld [vmem:[%s3970_s5] ss:$0 sm:$0xff] }
 0x44b   :  { %v3640_v5 = vpop.f32.mrb[2].mxu1 }
 0x44c   :  { %v3642_v6 = vpop.f32.mrb[3].mxu1 }
 0x450   :  { %v2905_v7 = vpop.f32.mrb[4].mxu1 }
 0x451   :  { %v527_v9 = vpop.f32.mrb[5].mxu1 }
 0x452   :  { %v3199_v10 = vpack.i.bf16 %v2905_v7, %v527_v9 }
 0x483   :  { %v2919_v12 = vpop.f32.mrb[6].mxu1 }
 0x484   :  { %v731_v14 = vpop.f32.mrb[7].mxu1 }
 0x485   :  { %v3204_v15 = vpack.i.bf16 %v2919_v12, %v731_v14 }
 0x48b   :  { %v2926_v16 = vpop.f32.mrb[8].mxu1 }
 0x48c   :  { %v832_v17 = vmul.f32 0.35355338, %v2926_v16  ;;  %v822_v18 = vpop.f32.mrb[9].mxu1 }
 0x48d   :  { %v831_v20 = vmul.f32 0.35355338, %v822_v18 }
 0x48e   :  { %v834_v21 = vadd.f32 %v832_v17, %v3587_v32 }
 0x48f   :  { %v833_v22 = vadd.f32 %v831_v20, %v3592_v35 }
 0x490   :  { %v838_v23 = vsel %vm222_vm4, %v834_v21, -inf }
 0x491   :  { %839 = vmax.xlane.f32.xlu0 %v838_v23  ;;  %v835_v24 = vsel %vm222_vm4, %v833_v22, -inf }
 0x492   :  { %836 = vmax.xlane.f32.xlu1 %v835_v24 }
 0x51e   :  { %v840_v25 = vpop.xlane.xlu0 %839 }
 0x51f   :  { %v842_v26 = vsub.f32 %v834_v21, %v840_v25  ;;  %v837_v27 = vpop.xlane.xlu1 %836 }
 0x520   :  { %v841_v28 = vsub.f32 %v833_v22, %v837_v27 }
 0x521   :  { %v845_v29 = vmul.f32 1.442695, %v842_v26 }
 0x522   :  { %v843_v30 = vmul.f32 1.442695, %v841_v28  ;;  %v3274_v28 = vld [vmem:[%s3973_s8 + $0x8] sm:$0xff]  }
 0x523   :  { %3315 = vpow2.f32 %v845_v29 }
 0x524   :  { %3317 = vpow2.f32 %v843_v30 }
 0x52d   :  { %v3316_v31 = vpop.eup %3315 }
 0x52e   :  { %v3318_v33 = vpop.eup %3317  ;;  %v850_v34 = vsel %vm222_vm4, %v3316_v31, 0.0 }
 0x52f   :  { %851 = vadd.xlane.f32.xlu1 %v850_v34  ;;  %v847_v36 = vsel %vm222_vm4, %v3318_v33, 0.0 }
 0x530   :  { %848 = vadd.xlane.f32.xlu0 %v847_v36 }
 0x540   :  { %3200 = vrot.lane.b32.xlu1 %v3199_v10, %s3983_s0 }
 0x544   :  { %3205 = vrot.lane.b32.xlu1 %v3204_v15, %s3984_s22 }
 0x546   :  { %3195 = vrot.lane.b32.xlu0 %v3543_v13, %s3985_s23  ;;  %v3271_v13 = vld [vmem:[%s3969_s4] sm:$0xff]   ;;  %s3986_s23 = smov 24  }
 0x547   :  { %2935 = vmatpush3.bf16.msra.mxu0 %v3271_v13 }
 0x548   :  { %2936 = vmatprep.subr.bf16.mxu0 %v3405_v1 }
 0x54b   :  { %2937 = vmatpush3.bf16.msra.mxu0 %v3272_v46  ;;  %v3275_v46 = vld [vmem:[%s3975_s10] sm:$0xff]  }
 0x54c   :  { %2950 = vmatprep.subr.bf16.mxu0 %v3405_v1 }
 0x5bc   :  { %v852_v37 = vpop.xlane.xlu1 %851 }
 0x5bd   :  { %3319 = vrcp.f32 %v852_v37  ;;  %v849_v38 = vpop.xlane.xlu0 %848 }
 0x5be   :  { %3321 = vrcp.f32 %v849_v38  ;;  %v2683_v38 = vld [vmem:[%s3971_s6] ss:$0 sm:$0xff] }
 0x5c0   :  { %v3201_v50 = vpop.permute.xlu1 %3200 }
 0x5c1   :  { %v3196_v39 = vpop.permute.xlu0 %3195  ;;  %v3203_v51 = vunpack.i.h.bf16 %v3201_v50  ;;  %v3202_v52 = vunpack.i.l.bf16 %v3201_v50  ;;  %v2685_v50 = vld [vmem:[%s3974_s9] ss:$0 sm:$0xff] }
 0x5c2   :  { %v3198_v40 = vunpack.i.h.bf16 %v3196_v39  ;;  %v3197_v41 = vunpack.i.l.bf16 %v3196_v39 }
 0x5c3   :  { %v969_v56 = vsel %vm134_vm2, %v3640_v5, %v3203_v51  ;;  %v968_v57 = vsel %vm134_vm2, %v3642_v6, %v3202_v52 }
 0x5c4   :  { %v3098_v42 = vpack.c.bf16 %v3198_v40, %v3197_v41  ;;  %v3206_v8 = vpop.permute.xlu1 %3205 }
 0x5c5   :  { %v3208_v53 = vunpack.i.h.bf16 %v3206_v8  ;;  %v3207_v54 = vunpack.i.l.bf16 %v3206_v8 }
 0x5c6   :  { %3099 = vmatprep.subr.bf16.mxu1 %v3098_v42 }
 0x5c7   :  { %v3320_v43 = vpop.eup %3319  ;;  %3101 = vmatpush3.bf16.msra.mxu1 %v3098_v42  ;;  %v970_v60 = vsel %vm222_vm4, %v968_v57, %v3207_v54  ;;  %v971_v61 = vsel %vm222_vm4, %v969_v56, %v3208_v53 }
 0x5c8   :  { %v3322_v44 = vpop.eup %3321  ;;  %2942 = vmatprep.subr.bf16.mxu1 %v3405_v1  ;;  %v856_v11 = vmul.f32 %v3320_v43, %v3316_v31  ;;  %v2684_v43 = vld [vmem:[%s3972_s7] ss:$0 sm:$0xff] }
 0x5c9   :  { %v855_v45 = vmul.f32 %v3322_v44, %v3318_v33 }
 0x5cb   :  { %2931 = vmatprep.mubr.msk.f32.mxu1 %vm222_vm4, %v855_v45 }
 0x5cc   :  { %2932 = vmatmul.mubr.msk.f32.vlgmr.msra.gmra.mrb[10].mxu1 %vm222_vm4, %v856_v11 }
 0x5cd   :  { %2946 = vmatprep.mubr.msk.bf16.mxu1 %vm3406_vm0, %v3405_v1 }
 0x69f   :  { %v2933_v47 = vpop.f32.mrb[10].mxu1 }
 0x6a0   :  { %v935_v48 = vpop.f32.mrb[11].mxu1 }
 0x6a1   :  { %v3209_v49 = vpack.i.bf16 %v2933_v47, %v935_v48  ;;  %v3276_v47 = vld [vmem:[%s3975_s10 + $0x8] sm:$0xff]   ;;  %v3277_v48 = vld [vmem:[%s3975_s10 + $0x10] sm:$0xff]  }
 0x6a3   :  { %3210 = vrot.lane.b32.xlu0 %v3209_v49, %s3986_s23  ;;  %v3278_v49 = vld [vmem:[%s3975_s10 + $0x18] sm:$0xff]  }
 0x715   :  { %v3211_v55 = vpop.permute.xlu0 %3210 }
 0x716   :  { %v3213_v58 = vunpack.i.h.bf16 %v3211_v55  ;;  %v3212_v59 = vunpack.i.l.bf16 %v3211_v55 }
 0x718   :  { %v973_v62 = vsel %vm972_vm5, %v970_v60, %v3212_v59  ;;  %v974_v63 = vsel %vm972_vm5, %v971_v61, %v3213_v58 }
 0x719   :  { %v975_v0 = vpack.c.bf16 %v974_v63, %v973_v62 }
 0x71b   :  { %2939 = vmatmul.mubr.msk.bf16.vlgmr.msra.gmra.mrb[8].mxu0 %vm83_vm1, %v975_v0 }
 0x71c   :  { %2958 = vmatprep.mubr.msk.bf16.mxu0 %vm3406_vm0, %v3405_v1  ;;  %2951 = vmatpush3.bf16.msra.mxu0 %v3275_v46  ;;  %v2695_v46 = vld [vmem:[%s3977_s12] ss:$0 sm:$0xff] }
 0x71d   :  { %2952 = vmatprep.subr.bf16.mxu0 %v3405_v1 }
 0x720   :  { %2953 = vmatpush3.bf16.msra.mxu0 %v3276_v47 }
 0x721   :  { %2954 = vmatprep.subr.bf16.mxu0 %v3405_v1 }
 0x724   :  { %2955 = vmatpush3.bf16.msra.mxu0 %v3277_v48 }
 0x725   :  { %2956 = vmatprep.subr.bf16.mxu0 %v3405_v1 }
 0x728   :  { %2957 = vmatpush3.bf16.msra.mxu0 %v3278_v49 }
 0x7ee   :  { %v1036_v5 = vpop.f32.mrb[8].mxu0 }
 0x7ef   :  { %v1037_v6 = vadd.f32 %v2679_v2, %v1036_v5  ;;  %v2940_v7 = vpop.f32.mrb[9].mxu0 }
 0x7f0   :  { %v1039_v9 = vpop.f32.mrb[10].mxu0 }
 0x7f1   :  { %v1040_v10 = vadd.f32 %v2679_v2, %v1039_v9  ;;  %v2941_v12 = vpop.f32.mrb[11].mxu0  ;;  %v1043_v14 = vadd.f32 %v1037_v6, %v3519_v3 }
 0x7f3   :  { %v1047_v15 = vsel %vm83_vm1, %v1043_v14, 0.0  ;;  %v1044_v16 = vadd.f32 %v1040_v10, %v3524_v4  ;;  %v3273_v4 = vld [vmem:[%s3973_s8] sm:$0xff]  }
 0x7f4   :  { %1048 = vadd.xlane.f32.xlu1 %v1047_v15  ;;  %2943 = vmatpush3.bf16.msra.mxu1 %v3273_v4 }
 0x7f5   :  { %v1050_v17 = vsel %vm83_vm1, %v1044_v16, 0.0  ;;  %2944 = vmatprep.subr.bf16.mxu1 %v3405_v1 }
 0x7f6   :  { %1051 = vadd.xlane.f32.xlu0 %v1050_v17  ;;  %v2689_v17 = vld [vmem:[%s3976_s11] ss:$0 sm:$0xff] }
 0x7f8   :  { %2945 = vmatpush3.bf16.msra.mxu1 %v3274_v28 }
 0x7f9   :  { %2962 = vmatprep.subr.bf16.mxu1 %v3405_v1 }
 0x881   :  { %v1049_v18 = vpop.xlane.xlu1 %1048 }
 0x882   :  { %v1054_v20 = vmul.f32 0.03125, %v1049_v18 }
 0x883   :  { %v1052_v21 = vpop.xlane.xlu0 %1051 }
 0x884   :  { %v1056_v22 = vsub.f32 %v1043_v14, %v1054_v20  ;;  %v1055_v23 = vmul.f32 0.03125, %v1052_v21 }
 0x886   :  { %v1057_v24 = vsub.f32 %v1044_v16, %v1055_v23  ;;  %v1058_v25 = vmul.f32 %v1056_v22, %v1056_v22 }
 0x888   :  { %v1060_v26 = vsel %vm83_vm1, %v1058_v25, 0.0  ;;  %v1059_v27 = vmul.f32 %v1057_v24, %v1057_v24 }
 0x889   :  { %1061 = vadd.xlane.f32.xlu0 %v1060_v26 }
 0x88a   :  { %v1063_v3 = vsel %vm83_vm1, %v1059_v27, 0.0 }
 0x88b   :  { %1064 = vadd.xlane.f32.xlu1 %v1063_v3 }
 0x916   :  { %v1062_v29 = vpop.xlane.xlu0 %1061 }
 0x917   :  { %v1066_v30 = vmul.f32 0.03125, %v1062_v29 }
 0x918   :  { %v1065_v31 = vpop.xlane.xlu1 %1064 }
 0x919   :  { %v1068_v33 = vadd.f32 1e-12, %v1066_v30  ;;  %v1067_v34 = vmul.f32 0.03125, %v1065_v31 }
 0x91b   :  { %3323 = vrsqrt.f32 %v1068_v33  ;;  %v1069_v36 = vadd.f32 1e-12, %v1067_v34 }
 0x91d   :  { %3325 = vrsqrt.f32 %v1069_v36 }
 0x925   :  { %v3324_v37 = vpop.eup %3323 }
 0x926   :  { %v1072_v39 = vmul.f32 %v3324_v37, %v1056_v22 }
 0x927   :  { %v3326_v40 = vpop.eup %3325 }
 0x928   :  { %v1080_v41 = vmul.f32 %v2683_v38, %v1072_v39  ;;  %v1073_v42 = vmul.f32 %v3326_v40, %v1057_v24  ;;  %v3279_v39 = vld [vmem:[%s3967_s2 + $0x10] sm:$0xff]   ;;  %v3280_v40 = vld [vmem:[%s3967_s2 + $0x18] sm:$0xff]   ;;  %s4001_s2 = smov 24  }
 0x92a   :  { %v1081_v44 = vmul.f32 %v2683_v38, %v1073_v42  ;;  %v1088_v45 = vadd.f32 %v2684_v43, %v1080_v41 }
 0x92c   :  { %v1089_v11 = vadd.f32 %v2684_v43, %v1081_v44 }
 0x92e   :  { %v1090_v13 = vpack.c.bf16 %v1089_v11, %v1088_v45 }
 0x930   :  { %2947 = vmatmul.mubr.msk.bf16.vlgmr.msra.gmra.mrb[12].mxu1 %vm83_vm1, %v1090_v13 }
 0x931   :  { %2966 = vmatprep.mubr.msk.bf16.mxu1 %vm3406_vm0, %v3405_v1  ;;  %2963 = vmatpush3.bf16.msra.mxu1 %v3279_v39 }
 0x932   :  { %2964 = vmatprep.subr.bf16.mxu1 %v3405_v1 }
 0x935   :  { %2965 = vmatpush3.bf16.msra.mxu1 %v3280_v40 }
 0xa03   :  { %v1151_v8 = vpop.f32.mrb[12].mxu1 }
 0xa04   :  { %v1152_v51 = vadd.f32 %v2685_v50, %v1151_v8  ;;  %v2948_v52 = vpop.f32.mrb[13].mxu1  ;;  %v2696_v8 = vld [vmem:[%s3978_s13] ss:$0 sm:$0xff] }
 0xa05   :  { %v1154_v53 = vpop.f32.mrb[14].mxu1 }
 0xa06   :  { %v1158_v54 = vmul.f32 %v1152_v51, %v1152_v51  ;;  %v1155_v55 = vadd.f32 %v2685_v50, %v1154_v53  ;;  %v2949_v56 = vpop.f32.mrb[15].mxu1 }
 0xa08   :  { %v1160_v57 = vmul.f32 %v1158_v54, %v1152_v51  ;;  %v1159_v58 = vmul.f32 %v1155_v55, %v1155_v55 }
 0xa0a   :  { %v1162_v59 = vmul.f32 0.044715, %v1160_v57  ;;  %v1161_v60 = vmul.f32 %v1159_v58, %v1155_v55 }
 0xa0c   :  { %v1164_v61 = vadd.f32 %v1162_v59, %v1152_v51  ;;  %v1163_v62 = vmul.f32 0.044715, %v1161_v60 }
 0xa0e   :  { %v1166_v63 = vmul.f32 0.7978846, %v1164_v61  ;;  %v1165_v0 = vadd.f32 %v1163_v62, %v1155_v55 }
 0xa10   :  { %3327 = vtanh.f32 %v1166_v63  ;;  %v1167_v2 = vmul.f32 0.7978846, %v1165_v0 }
 0xa12   :  { %3329 = vtanh.f32 %v1167_v2 }
 0xa1a   :  { %v3328_v5 = vpop.eup %3327 }
 0xa1b   :  { %v1170_v6 = vadd.f32 1.0, %v3328_v5 }
 0xa1c   :  { %v3330_v7 = vpop.eup %3329 }
 0xa1d   :  { %v1172_v9 = vmul.f32 0.5, %v1170_v6  ;;  %v1171_v10 = vadd.f32 1.0, %v3330_v7 }
 0xa1f   :  { %v1173_v12 = vmul.f32 0.5, %v1171_v10  ;;  %v1174_v14 = vmul.f32 %v1172_v9, %v1152_v51 }
 0xa21   :  { %v1175_v15 = vmul.f32 %v1173_v12, %v1155_v55  ;;  %v2702_v55 = vld [vmem:[%s3968_s3 + $0x1] ss:$0 sm:$0xff]  ;;  %s3995_s3 = smov 72  }
 0xa23   :  { %v1176_v16 = vpack.c.bf16 %v1175_v15, %v1174_v14 }
 0xa25   :  { %2959 = vmatmul.mubr.msk.bf16.vlgmr.msra.gmra.mrb[12].mxu0 %vm1216_vm6, %v1176_v16 }
 0xaf8   :  { %v1254_v18 = vpop.f32.mrb[12].mxu0 }
 0xaf9   :  { %v1255_v20 = vadd.f32 %v2689_v17, %v1254_v18  ;;  %v2960_v21 = vpop.f32.mrb[13].mxu0 }
 0xafa   :  { %v1257_v22 = vpop.f32.mrb[14].mxu0 }
 0xafb   :  { %v1258_v23 = vadd.f32 %v2689_v17, %v1257_v22  ;;  %v2961_v24 = vpop.f32.mrb[15].mxu0  ;;  %v1261_v25 = vadd.f32 %v1255_v20, %v1088_v45 }
 0xafd   :  { %v1265_v26 = vsel %vm83_vm1, %v1261_v25, 0.0  ;;  %v1262_v27 = vadd.f32 %v1258_v23, %v1089_v11 }
 0xafe   :  { %1266 = vadd.xlane.f32.xlu0 %v1265_v26 }
 0xaff   :  { %v1268_v3 = vsel %vm83_vm1, %v1262_v27, 0.0 }
 0xb00   :  { %1269 = vadd.xlane.f32.xlu1 %v1268_v3 }
 0xb8b   :  { %v1267_v4 = vpop.xlane.xlu0 %1266 }
 0xb8c   :  { %v1271_v28 = vmul.f32 0.03125, %v1267_v4 }
 0xb8d   :  { %v1270_v29 = vpop.xlane.xlu1 %1269 }
 0xb8e   :  { %v1273_v30 = vsub.f32 %v1261_v25, %v1271_v28  ;;  %v1272_v31 = vmul.f32 0.03125, %v1270_v29 }
 0xb90   :  { %v1274_v33 = vsub.f32 %v1262_v27, %v1272_v31  ;;  %v1275_v34 = vmul.f32 %v1273_v30, %v1273_v30 }
 0xb92   :  { %v1277_v36 = vsel %vm83_vm1, %v1275_v34, 0.0  ;;  %v1276_v37 = vmul.f32 %v1274_v33, %v1274_v33 }
 0xb93   :  { %1278 = vadd.xlane.f32.xlu0 %v1277_v36 }
 0xb94   :  { %v1280_v38 = vsel %vm83_vm1, %v1276_v37, 0.0 }
 0xb95   :  { %1281 = vadd.xlane.f32.xlu1 %v1280_v38 }
 0xc20   :  { %v1279_v41 = vpop.xlane.xlu0 %1278 }
 0xc21   :  { %v1283_v42 = vmul.f32 0.03125, %v1279_v41 }
 0xc22   :  { %v1282_v43 = vpop.xlane.xlu1 %1281 }
 0xc23   :  { %v1285_v44 = vadd.f32 1e-12, %v1283_v42  ;;  %v1284_v45 = vmul.f32 0.03125, %v1282_v43 }
 0xc25   :  { %3331 = vrsqrt.f32 %v1285_v44  ;;  %v1286_v11 = vadd.f32 1e-12, %v1284_v45 }
 0xc27   :  { %3333 = vrsqrt.f32 %v1286_v11 }
 0xc2f   :  { %v3332_v13 = vpop.eup %3331 }
 0xc30   :  { %v1289_v47 = vmul.f32 %v3332_v13, %v1273_v30 }
 0xc31   :  { %v3334_v48 = vpop.eup %3333 }
 0xc32   :  { %v1297_v49 = vmul.f32 %v2695_v46, %v1289_v47  ;;  %v1290_v50 = vmul.f32 %v3334_v48, %v1274_v33 }
 0xc34   :  { %v1298_v51 = vmul.f32 %v2695_v46, %v1290_v50  ;;  %v3744_v52 = vadd.f32 %v2696_v8, %v1297_v49 }
 0xc36   :  { %v3746_v53 = vadd.f32 %v2696_v8, %v1298_v51 }
 0xc38   :  { %v1307_v54 = vpack.c.bf16 %v3746_v53, %v3744_v52 }
 0xc3a   :  { %2967 = vmatmul.mubr.msk.bf16.vlgmr.msra.gmra.mrb[16].mxu1 %vm83_vm1, %v1307_v54 }
 0xd0d   :  { %v1370_v56 = vpop.f32.mrb[16].mxu1 }
 0xd0e   :  { %v3754_v57 = vadd.f32 %v2702_v55, %v1370_v56  ;;  %v2968_v58 = vpop.f32.mrb[17].mxu1 }
 0xd0f   :  { %v1373_v59 = vpop.f32.mrb[18].mxu1 }
 0xd10   :  { %v3756_v60 = vadd.f32 %v2702_v55, %v1373_v59  ;;  %v2969_v61 = vpop.f32.mrb[19].mxu1  ;;  %2974 = vmatprep.mubr.msk.f32.mxu1 %vm134_vm2, %v3754_v57 }
 0xd12   :  { %v3762_v62 = vpack.i.bf16 %v3756_v60, %v3754_v57 }
 0xd14   :  { %3220 = vrot.lane.b32.xlu1 %v3762_v62, %s3411_s21  ;;  %3215 = vrot.lane.b32.xlu0 %v3762_v62, %s3409_s19 }
 0xd18   :  { %1579 = vrot.lane.b32.xlu1 %v3754_v57, %s3407_s17  ;;  %3225 = vrot.lane.b32.xlu0 %v3762_v62, %s3408_s18  ;;  %s3997_s18 = smov 104  }
 0xd1c   :  { %1581 = vrot.lane.b32.xlu1 %v3756_v60, %s3407_s17  ;;  %1783 = vrot.lane.b32.xlu0 %v3754_v57, %s3410_s20  ;;  %s3996_s17 = smov 56  }
 0xd20   :  { %1785 = vrot.lane.b32.xlu1 %v3756_v60, %s3410_s20 }
 0xd86   :  { %v3221_v63 = vpop.permute.xlu1 %3220  ;;  %v3216_v0 = vpop.permute.xlu0 %3215 }
 0xd87   :  { %v3223_v2 = vunpack.i.h.bf16 %v3221_v63  ;;  %v3222_v5 = vunpack.i.l.bf16 %v3221_v63  ;;  %v3218_v6 = vunpack.i.h.bf16 %v3216_v0  ;;  %v3217_v7 = vunpack.i.l.bf16 %v3216_v0 }
 0xd89   :  { %v3112_v9 = vpack.c.bf16 %v3223_v2, %v3222_v5  ;;  %v3102_v10 = vpack.c.bf16 %v3218_v6, %v3217_v7 }
 0xd8a   :  { %v1580_v12 = vpop.permute.xlu1 %1579  ;;  %v3226_v14 = vpop.permute.xlu0 %3225 }
 0xd8b   :  { %v3228_v15 = vunpack.i.h.bf16 %v3226_v14  ;;  %v3227_v16 = vunpack.i.l.bf16 %v3226_v14  ;;  %3104 = vmatprep.subr.msk.bf16.mxu1 %vm3560_vm3, %v3102_v10  ;;  %3114 = vmatprep.subr.msk.bf16.mxu0 %vm3560_vm3, %v3112_v9 }
 0xd8c   :  { %2988 = vmatprep.mubr.msk.f32.mxu0 %vm134_vm2, %v1580_v12  ;;  %3107 = vmatpush3.bf16.xpose.msk.msra.mxu1 %vm3560_vm3, %v3102_v10 }
 0xd8d   :  { %v3122_v17 = vpack.c.bf16 %v3228_v15, %v3227_v16  ;;  %3117 = vmatpush3.bf16.xpose.msk.msra.mxu0 %vm3560_vm3, %v3112_v9 }
 0xd8e   :  { %v1582_v18 = vpop.permute.xlu1 %1581  ;;  %v1784_v20 = vpop.permute.xlu0 %1783 }
 0xd8f   :  { %3124 = vmatprep.subr.msk.bf16.mxu0 %vm3560_vm3, %v3122_v17 }
 0xd92   :  { %v1786_v21 = vpop.permute.xlu1 %1785 }
 0xd93   :  { %2975 = vmatmul.mubr.msk.f32.vlgmr.msra.gmra.mrb[20].mxu1 %vm134_vm2, %v3756_v60 }
 0xd94   :  { %2989 = vmatmul.mubr.msk.f32.vlgmr.msra.gmra.mrb[16].mxu0 %vm134_vm2, %v1582_v18 }
 0xd95   :  { %3127 = vmatpush3.bf16.xpose.msk.msra.mxu0 %vm3560_vm3, %v3122_v17  ;;  %3002 = vmatprep.mubr.msk.f32.mxu0 %vm134_vm2, %v1784_v20 }
 0xd9c   :  { %3003 = vmatmul.mubr.msk.f32.vlgmr.msra.gmra.mrb[18].mxu0 %vm134_vm2, %v1786_v21 }
 0xe66   :  { %v2976_v22 = vpop.f32.mrb[20].mxu1 }
 0xe67   :  { %v1467_v23 = vmul.f32 0.35355338, %v2976_v22  ;;  %v2990_v24 = vpop.f32.mrb[16].mxu0  ;;  %v1457_v25 = vpop.f32.mrb[21].mxu1 }
 0xe68   :  { %v1466_v26 = vmul.f32 0.35355338, %v1457_v25  ;;  %v1661_v27 = vpop.f32.mrb[17].mxu0  ;;  %v1671_v30 = vmul.f32 0.35355338, %v2990_v24 }
 0xe69   :  { %v1670_v3 = vmul.f32 0.35355338, %v1661_v27  ;;  %v1469_v4 = vadd.f32 %v1467_v23, %v3587_v32 }
 0xe6a   :  { %v1468_v28 = vadd.f32 %v1466_v26, %v3592_v35  ;;  %v1673_v39 = vadd.f32 %v1671_v30, %v3587_v32 }
 0xe6b   :  { %v1473_v29 = vsel %vm222_vm4, %v1469_v4, -inf  ;;  %v1672_v33 = vadd.f32 %v1670_v3, %v3592_v35 }
 0xe6c   :  { %1474 = vmax.xlane.f32.xlu1 %v1473_v29  ;;  %v1470_v31 = vsel %vm222_vm4, %v1468_v28, -inf  ;;  %v1677_v42 = vsel %vm222_vm4, %v1673_v39, -inf }
 0xe6d   :  { %1471 = vmax.xlane.f32.xlu0 %v1470_v31  ;;  %v1674_v38 = vsel %vm222_vm4, %v1672_v33, -inf }
 0xe6f   :  { %v3004_v34 = vpop.f32.mrb[18].mxu0 }
 0xe70   :  { %v1875_v36 = vmul.f32 0.35355338, %v3004_v34  ;;  %v1865_v37 = vpop.f32.mrb[19].mxu0 }
 0xe71   :  { %v1874_v40 = vmul.f32 0.35355338, %v1865_v37  ;;  %1675 = vmax.xlane.f32.xlu0 %v1674_v38 }
 0xe72   :  { %v1877_v43 = vadd.f32 %v1875_v36, %v3587_v32 }
 0xe73   :  { %v1876_v41 = vadd.f32 %v1874_v40, %v3592_v35 }
 0xe74   :  { %v1881_v45 = vsel %vm222_vm4, %v1877_v43, -inf }
 0xe75   :  { %v1878_v44 = vsel %vm222_vm4, %v1876_v41, -inf  ;;  %1678 = vmax.xlane.f32.xlu0 %v1677_v42 }
 0xe76   :  { %1879 = vmax.xlane.f32.xlu1 %v1878_v44 }
 0xe79   :  { %1882 = vmax.xlane.f32.xlu0 %v1881_v45 }
 0xe87   :  { %3230 = vrot.lane.b32.xlu1 %v3762_v62, %s3413_s27 }
 0xef9   :  { %v1475_v11 = vpop.xlane.xlu1 %1474 }
 0xefa   :  { %v1477_v13 = vsub.f32 %v1469_v4, %v1475_v11  ;;  %v1472_v46 = vpop.xlane.xlu0 %1471 }
 0xefb   :  { %v1476_v47 = vsub.f32 %v1468_v28, %v1472_v46 }
 0xefc   :  { %v1480_v48 = vmul.f32 1.442695, %v1477_v13 }
 0xefd   :  { %v1478_v35 = vmul.f32 1.442695, %v1476_v47 }
 0xefe   :  { %3335 = vpow2.f32 %v1480_v48  ;;  %v1676_v49 = vpop.xlane.xlu0 %1675 }
 0xeff   :  { %3337 = vpow2.f32 %v1478_v35  ;;  %v1680_v32 = vsub.f32 %v1672_v33, %v1676_v49 }
 0xf01   :  { %v1682_v50 = vmul.f32 1.442695, %v1680_v32 }
 0xf02   :  { %v1679_v8 = vpop.xlane.xlu0 %1678 }
 0xf03   :  { %3339 = vpow2.f32 %v1682_v50  ;;  %v1880_v51 = vpop.xlane.xlu1 %1879  ;;  %v1681_v54 = vsub.f32 %v1673_v39, %v1679_v8 }
 0xf04   :  { %v1884_v18 = vsub.f32 %v1876_v41, %v1880_v51 }
 0xf05   :  { %v1684_v55 = vmul.f32 1.442695, %v1681_v54 }
 0xf06   :  { %v1883_v56 = vpop.xlane.xlu0 %1882  ;;  %v1886_v20 = vmul.f32 1.442695, %v1884_v18 }
 0xf07   :  { %3341 = vpow2.f32 %v1684_v55  ;;  %v3231_v58 = vpop.permute.xlu1 %3230  ;;  %v1885_v59 = vsub.f32 %v1877_v43, %v1883_v56 }
 0xf08   :  { %v3336_v61 = vpop.eup %3335  ;;  %v3233_v63 = vunpack.i.h.bf16 %v3231_v58  ;;  %v3232_v0 = vunpack.i.l.bf16 %v3231_v58 }
 0xf09   :  { %v3338_v2 = vpop.eup %3337  ;;  %v1888_v5 = vmul.f32 1.442695, %v1885_v59  ;;  %v1485_v6 = vsel %vm222_vm4, %v3336_v61, 0.0 }
 0xf0a   :  { %v3108_v7 = vpack.c.bf16 %v3233_v63, %v3232_v0  ;;  %1486 = vadd.xlane.f32.xlu0 %v1485_v6  ;;  %v1482_v9 = vsel %vm222_vm4, %v3338_v2, 0.0  ;;  %v3379_v0 = vld [vmem:[%s3966_s1 + $0x8] sm:$0xff] }
 0xf0b   :  { %3343 = vpow2.f32 %v1888_v5  ;;  %1483 = vadd.xlane.f32.xlu1 %v1482_v9  ;;  %v3380_v5 = vld [vmem:[%s3966_s1] sm:$0xff]  ;;  %s4000_s1 = smov 8  }
 0xf0c   :  { %3109 = vmatprep.subr.bf16.mxu1 %v3108_v7  ;;  %3345 = vpow2.f32 %v1886_v20 }
 0xf0d   :  { %v3340_v10 = vpop.eup %3339  ;;  %3111 = vmatpush3.bf16.msra.mxu1 %v3108_v7 }
 0xf0e   :  { %v1686_v12 = vsel %vm222_vm4, %v3340_v10, 0.0 }
 0xf0f   :  { %1687 = vadd.xlane.f32.xlu1 %v1686_v12 }
 0xf11   :  { %v3342_v14 = vpop.eup %3341 }
 0xf12   :  { %v1689_v15 = vsel %vm222_vm4, %v3342_v14, 0.0 }
 0xf13   :  { %1690 = vadd.xlane.f32.xlu0 %v1689_v15 }
 0xf15   :  { %v3344_v16 = vpop.eup %3343 }
 0xf16   :  { %v1893_v17 = vsel %vm222_vm4, %v3344_v16, 0.0  ;;  %v3346_v21 = vpop.eup %3345 }
 0xf17   :  { %1894 = vadd.xlane.f32.xlu0 %v1893_v17  ;;  %v1890_v22 = vsel %vm222_vm4, %v3346_v21, 0.0 }
 0xf20   :  { %3240 = vrot.lane.b32.xlu1 %v3762_v62, %s3414_s28  ;;  %s3998_s28 = smov 40  }
 0xf24   :  { %3245 = vrot.lane.b32.xlu1 %v3762_v62, %s3995_s3  ;;  %s2643_s3 = sshll.u32 %s3421_s30, 4  ;;  %s2644_s3 = int_to_ptr.vmem [resolvable:$true] %s2643_s3 }
 0xf25   :  { %p3386_p1 = scmp.lt.s32.totalorder %s2644_s3, %s2644_s3 }
 0xf2d   :  { %3235 = vrot.lane.b32.xlu0 %v3762_v62, %s3996_s17 }
 0xf31   :  { %1987 = vrot.lane.b32.xlu0 %v3754_v57, %s3997_s18 }
 0xf48   :  { %1891 = vadd.xlane.f32.xlu1 %v1890_v22 }
 0xf59   :  { %1989 = vrot.lane.b32.xlu1 %v3756_v60, %s3997_s18 }
 0xf97   :  { %v1487_v23 = vpop.xlane.xlu0 %1486 }
 0xf98   :  { %3347 = vrcp.f32 %v1487_v23  ;;  %v1484_v24 = vpop.xlane.xlu1 %1483 }
 0xf99   :  { %3349 = vrcp.f32 %v1484_v24 }
 0xf9c   :  { %v1688_v25 = vpop.xlane.xlu1 %1687 }
 0xf9d   :  { %3351 = vrcp.f32 %v1688_v25 }
 0xfa0   :  { %v1691_v26 = vpop.xlane.xlu0 %1690  ;;  %v3241_v3 = vpop.permute.xlu1 %3240 }
 0xfa1   :  { %3353 = vrcp.f32 %v1691_v26  ;;  %v3243_v33 = vunpack.i.h.bf16 %v3241_v3  ;;  %v3242_v34 = vunpack.i.l.bf16 %v3241_v3 }
 0xfa2   :  { %v3348_v27 = vpop.eup %3347 }
 0xfa3   :  { %v3350_v57 = vpop.eup %3349  ;;  %v1491_v29 = vmul.f32 %v3348_v27, %v3336_v61  ;;  %v3128_v41 = vpack.c.bf16 %v3243_v33, %v3242_v34 }
 0xfa4   :  { %v1895_v4 = vpop.xlane.xlu0 %1894  ;;  %v1490_v28 = vmul.f32 %v3350_v57, %v3338_v2  ;;  %v3246_v38 = vpop.permute.xlu1 %3245 }
 0xfa5   :  { %v3248_v42 = vunpack.i.h.bf16 %v3246_v38  ;;  %v3247_v43 = vunpack.i.l.bf16 %v3246_v38  ;;  %3355 = vrcp.f32 %v1895_v4 }
 0xfa6   :  { %2981 = vmatprep.mubr.msk.f32.mxu1 %vm222_vm4, %v1490_v28 }
 0xfa7   :  { %v3352_v30 = vpop.eup %3351  ;;  %2982 = vmatmul.mubr.msk.f32.vlgmr.msra.gmra.mrb[22].mxu1 %vm222_vm4, %v1491_v29  ;;  %v3132_v45 = vpack.c.bf16 %v3248_v42, %v3247_v43  ;;  %v3281_v29 = vld [vmem:[%s3969_s4 + $0x10] sm:$0xff]  }
 0xfa8   :  { %v3236_v60 = vpop.permute.xlu0 %3235  ;;  %v1694_v31 = vmul.f32 %v3352_v30, %v3340_v10  ;;  %v3282_v30 = vld [vmem:[%s3969_s4 + $0x18] sm:$0xff]  }
 0xfa9   :  { %v3238_v36 = vunpack.i.h.bf16 %v3236_v60  ;;  %v3237_v37 = vunpack.i.l.bf16 %v3236_v60 }
 0xfaa   :  { %2995 = vmatprep.mubr.msk.f32.mxu1 %vm222_vm4, %v1694_v31 }
 0xfab   :  { %v3118_v39 = vpack.c.bf16 %v3238_v36, %v3237_v37  ;;  %v3354_v40 = vpop.eup %3353 }
 0xfac   :  { %v1695_v44 = vmul.f32 %v3354_v40, %v3342_v14  ;;  %v1988_v35 = vpop.permute.xlu0 %1987 }
 0xfad   :  { %3119 = vmatprep.subr.bf16.mxu1 %v3118_v39 }
 0xfae   :  { %3121 = vmatpush3.bf16.msra.mxu1 %v3118_v39 }
 0xfaf   :  { %3129 = vmatprep.subr.bf16.mxu1 %v3128_v41  ;;  %v3356_v13 = vpop.eup %3355 }
 0xfb0   :  { %v1899_v48 = vmul.f32 %v3356_v13, %v3344_v16 }
 0xfb1   :  { %2996 = vmatmul.mubr.msk.f32.vlgmr.msra.gmra.mrb[24].mxu1 %vm222_vm4, %v1695_v44 }
 0xfb2   :  { %3131 = vmatpush3.bf16.msra.mxu1 %v3128_v41 }
 0xfb3   :  { %3134 = vmatprep.subr.msk.bf16.mxu1 %vm3560_vm3, %v3132_v45 }
 0xfd5   :  { %v1892_v11 = vpop.xlane.xlu1 %1891 }
 0xfd6   :  { %3357 = vrcp.f32 %v1892_v11 }
 0xfd9   :  { %v1990_v49 = vpop.permute.xlu1 %1989 }
 0xfe0   :  { %v3358_v46 = vpop.eup %3357 }
 0xfe1   :  { %v1898_v47 = vmul.f32 %v3358_v46, %v3346_v21 }
 0xfe3   :  { %3009 = vmatprep.mubr.msk.f32.mxu1 %vm222_vm4, %v1898_v47 }
 0xfe4   :  { %3010 = vmatmul.mubr.msk.f32.vlgmr.msra.gmra.mrb[26].mxu1 %vm222_vm4, %v1899_v48 }
 0xfe5   :  { %3137 = vmatpush3.bf16.xpose.msk.msra.mxu1 %vm3560_vm3, %v3132_v45  ;;  %3016 = vmatprep.mubr.msk.f32.mxu1 %vm134_vm2, %v1988_v35  ;;  %v2735_v35 = vld [vmem:[%s3970_s5 + $0x1] ss:$0 sm:$0xff] }
 0xfe6   :  { %3034 = vmatprep.subr.bf16.mxu1 %v3405_v1 }
 0xfec   :  { %3017 = vmatmul.mubr.msk.f32.vlgmr.msra.gmra.mrb[28].mxu1 %vm134_vm2, %v1990_v49 }
 0xfed   :  { %3038 = vmatprep.mubr.msk.bf16.mxu1 %vm3406_vm0, %v3405_v1 }
0x107a   :  { %v3841_v32 = vpop.f32.mrb[22].mxu1 }
0x107b   :  { %v3843_v50 = vpop.f32.mrb[23].mxu1 }
0x1084   :  { %v2997_v8 = vpop.f32.mrb[24].mxu1 }
0x1085   :  { %v1774_v51 = vpop.f32.mrb[25].mxu1 }
0x1086   :  { %v3254_v54 = vpack.i.bf16 %v2997_v8, %v1774_v51 }
0x10b7   :  { %v3011_v55 = vpop.f32.mrb[26].mxu1 }
0x10b8   :  { %v1978_v19 = vpop.f32.mrb[27].mxu1 }
0x10b9   :  { %v3259_v56 = vpack.i.bf16 %v3011_v55, %v1978_v19 }
0x10bf   :  { %v3018_v58 = vpop.f32.mrb[28].mxu1 }
0x10c0   :  { %v2079_v59 = vmul.f32 0.35355338, %v3018_v58  ;;  %v2069_v61 = vpop.f32.mrb[29].mxu1 }
0x10c1   :  { %v2078_v63 = vmul.f32 0.35355338, %v2069_v61 }
0x10c2   :  { %v2081_v2 = vadd.f32 %v3379_v0, %v2079_v59 }
0x10c3   :  { %v2080_v6 = vadd.f32 %v3380_v5, %v2078_v63 }
0x10c4   :  { %v2085_v7 = vsel %vm222_vm4, %v2081_v2, -inf }
0x10c5   :  { %2086 = vmax.xlane.f32.xlu1 %v2085_v7  ;;  %v2082_v9 = vsel %vm222_vm4, %v2080_v6, -inf }
0x10c6   :  { %2083 = vmax.xlane.f32.xlu0 %v2082_v9 }
0x10d6   :  { %3250 = vrot.lane.b32.xlu1 %v3762_v62, %s3998_s28 }
0x10da   :  { %3260 = vrot.lane.b32.xlu1 %v3259_v56, %s3999_s25 }
0x1152   :  { %v2087_v10 = vpop.xlane.xlu1 %2086 }
0x1153   :  { %v2089_v12 = vsub.f32 %v2081_v2, %v2087_v10  ;;  %v2084_v14 = vpop.xlane.xlu0 %2083  ;;  %v3284_v10 = vld [vmem:[%s3973_s8 + $0x18] sm:$0xff]  }
0x1154   :  { %v2088_v15 = vsub.f32 %v2080_v6, %v2084_v14 }
0x1155   :  { %v2092_v16 = vmul.f32 1.442695, %v2089_v12 }
0x1156   :  { %v2090_v17 = vmul.f32 1.442695, %v2088_v15  ;;  %v3251_v18 = vpop.permute.xlu1 %3250 }
0x1157   :  { %v3253_v20 = vunpack.i.h.bf16 %v3251_v18  ;;  %v3252_v21 = vunpack.i.l.bf16 %v3251_v18 }
0x1158   :  { %3359 = vpow2.f32 %v2090_v17 }
0x1159   :  { %v3138_v22 = vpack.c.bf16 %v3253_v20, %v3252_v21  ;;  %3361 = vpow2.f32 %v2092_v16 }
0x115a   :  { %v3261_v38 = vpop.permute.xlu1 %3260 }
0x115b   :  { %3139 = vmatprep.subr.bf16.mxu0 %v3138_v22  ;;  %v3263_v41 = vunpack.i.h.bf16 %v3261_v38  ;;  %v3262_v42 = vunpack.i.l.bf16 %v3261_v38 }
0x115c   :  { %3141 = vmatpush3.bf16.msra.mxu0 %v3138_v22  ;;  %v2741_v22 = vld [vmem:[%s3971_s6 + $0x1] ss:$0 sm:$0xff] }
0x115d   :  { %3026 = vmatprep.subr.bf16.mxu0 %v3405_v1 }
0x1162   :  { %v3360_v23 = vpop.eup %3359 }
0x1163   :  { %v2094_v62 = vsel %vm222_vm4, %v3360_v23, 0.0  ;;  %v3362_v24 = vpop.eup %3361 }
0x1164   :  { %2095 = vadd.xlane.f32.xlu0 %v2094_v62  ;;  %v2097_v25 = vsel %vm222_vm4, %v3362_v24, 0.0 }
0x1168   :  { %2098 = vadd.xlane.f32.xlu0 %v2097_v25  ;;  %v2742_v25 = vld [vmem:[%s3972_s7 + $0x1] ss:$0 sm:$0xff] }
0x117e   :  { %3255 = vrot.lane.b32.xlu0 %v3254_v54, %s4000_s1 }
0x11f1   :  { %v2096_v26 = vpop.xlane.xlu0 %2095 }
0x11f2   :  { %3363 = vrcp.f32 %v2096_v26 }
0x11f5   :  { %v2099_v27 = vpop.xlane.xlu0 %2098 }
0x11f6   :  { %3365 = vrcp.f32 %v2099_v27 }
0x11f9   :  { %v3256_v34 = vpop.permute.xlu0 %3255 }
0x11fa   :  { %v3258_v36 = vunpack.i.h.bf16 %v3256_v34  ;;  %v3257_v37 = vunpack.i.l.bf16 %v3256_v34 }
0x11fc   :  { %v3364_v57 = vpop.eup %3363  ;;  %v2216_v39 = vsel %vm134_vm2, %v3841_v32, %v3258_v36  ;;  %v2215_v40 = vsel %vm134_vm2, %v3843_v50, %v3257_v37 }
0x11fd   :  { %v2102_v3 = vmul.f32 %v3364_v57, %v3360_v23  ;;  %v2217_v11 = vsel %vm222_vm4, %v2215_v40, %v3262_v42  ;;  %v2218_v13 = vsel %vm222_vm4, %v2216_v39, %v3263_v41 }
0x11ff   :  { %3023 = vmatprep.mubr.msk.f32.mxu0 %vm222_vm4, %v2102_v3 }
0x1200   :  { %v3366_v4 = vpop.eup %3365 }
0x1201   :  { %v2103_v28 = vmul.f32 %v3366_v4, %v3362_v24  ;;  %v3285_v4 = vld [vmem:[%s3975_s10 + $0x20] sm:$0xff]  }
0x1203   :  { %3024 = vmatmul.mubr.msk.f32.vlgmr.msra.gmra.mrb[20].mxu0 %vm222_vm4, %v2103_v28  ;;  %v3286_v28 = vld [vmem:[%s3975_s10 + $0x28] sm:$0xff]  }
0x1204   :  { %3030 = vmatprep.mubr.msk.bf16.mxu0 %vm3406_vm0, %v3405_v1  ;;  %3027 = vmatpush3.bf16.msra.mxu0 %v3281_v29  ;;  %v3287_v29 = vld [vmem:[%s3975_s10 + $0x30] sm:$0xff]  }
0x1205   :  { %3028 = vmatprep.subr.bf16.mxu0 %v3405_v1 }
0x1208   :  { %3029 = vmatpush3.bf16.msra.mxu0 %v3282_v30  ;;  %v3288_v30 = vld [vmem:[%s3975_s10 + $0x38] sm:$0xff]  }
0x1209   :  { %3042 = vmatprep.subr.bf16.mxu0 %v3405_v1 }
0x12d6   :  { %v3025_v60 = vpop.f32.mrb[20].mxu0 }
0x12d7   :  { %v2182_v31 = vpop.f32.mrb[21].mxu0 }
0x12d8   :  { %v3264_v33 = vpack.i.bf16 %v3025_v60, %v2182_v31  ;;  %v2748_v60 = vld [vmem:[%s3974_s9 + $0x1] ss:$0 sm:$0xff] }
0x12da   :  { %3265 = vrot.lane.b32.xlu1 %v3264_v33, %s4001_s2 }
0x134c   :  { %v3266_v43 = vpop.permute.xlu1 %3265 }
0x134d   :  { %v3268_v44 = vunpack.i.h.bf16 %v3266_v43  ;;  %v3267_v45 = vunpack.i.l.bf16 %v3266_v43 }
0x134f   :  { %v2219_v46 = vsel %vm972_vm5, %v2217_v11, %v3267_v45  ;;  %v2220_v47 = vsel %vm972_vm5, %v2218_v13, %v3268_v44 }
0x1350   :  { %v2221_v48 = vpack.c.bf16 %v2220_v47, %v2219_v46 }
0x1352   :  { %3031 = vmatmul.mubr.msk.bf16.vlgmr.msra.gmra.mrb[24].mxu0 %vm83_vm1, %v2221_v48 }
0x1353   :  { %3050 = vmatprep.mubr.msk.bf16.mxu0 %vm3406_vm0, %v3405_v1  ;;  %3043 = vmatpush3.bf16.msra.mxu0 %v3285_v4 }
0x1354   :  { %3044 = vmatprep.subr.bf16.mxu0 %v3405_v1 }
0x1357   :  { %3045 = vmatpush3.bf16.msra.mxu0 %v3286_v28 }
0x1358   :  { %3046 = vmatprep.subr.bf16.mxu0 %v3405_v1 }
0x135b   :  { %3047 = vmatpush3.bf16.msra.mxu0 %v3287_v29 }
0x135c   :  { %3048 = vmatprep.subr.bf16.mxu0 %v3405_v1 }
0x135f   :  { %3049 = vmatpush3.bf16.msra.mxu0 %v3288_v30 }
0x1425   :  { %v2284_v49 = vpop.f32.mrb[24].mxu0 }
0x1426   :  { %v2285_v32 = vadd.f32 %v2735_v35, %v2284_v49  ;;  %v3032_v50 = vpop.f32.mrb[25].mxu0 }
0x1427   :  { %v2287_v8 = vpop.f32.mrb[26].mxu0 }
0x1428   :  { %v2288_v51 = vadd.f32 %v2735_v35, %v2287_v8  ;;  %v3033_v54 = vpop.f32.mrb[27].mxu0  ;;  %v2291_v55 = vadd.f32 %v2285_v32, %v3744_v52 }
0x142a   :  { %v2297_v19 = vsel %vm83_vm1, %v2291_v55, 0.0  ;;  %v2292_v56 = vadd.f32 %v2288_v51, %v3746_v53  ;;  %v3283_v53 = vld [vmem:[%s3973_s8 + $0x10] sm:$0xff]  }
0x142b   :  { %2298 = vadd.xlane.f32.xlu0 %v2297_v19  ;;  %3035 = vmatpush3.bf16.msra.mxu1 %v3283_v53 }
0x142c   :  { %v2300_v58 = vsel %vm83_vm1, %v2292_v56, 0.0  ;;  %3036 = vmatprep.subr.bf16.mxu1 %v3405_v1 }
0x142d   :  { %2301 = vadd.xlane.f32.xlu1 %v2300_v58 }
0x142f   :  { %3037 = vmatpush3.bf16.msra.mxu1 %v3284_v10 }
0x1430   :  { %3054 = vmatprep.subr.bf16.mxu1 %v3405_v1 }
0x14b8   :  { %v2299_v59 = vpop.xlane.xlu0 %2298 }
0x14b9   :  { %v2303_v61 = vmul.f32 0.03125, %v2299_v59 }
0x14ba   :  { %v2302_v63 = vpop.xlane.xlu1 %2301 }
0x14bb   :  { %v2305_v0 = vsub.f32 %v2291_v55, %v2303_v61  ;;  %v2304_v2 = vmul.f32 0.03125, %v2302_v63  ;;  %v2761_v55 = vld [vmem:[%s3976_s11 + $0x1] ss:$0 sm:$0xff] }
0x14bd   :  { %v2306_v5 = vsub.f32 %v2292_v56, %v2304_v2  ;;  %v2307_v6 = vmul.f32 %v2305_v0, %v2305_v0 }
0x14bf   :  { %v2309_v7 = vsel %vm83_vm1, %v2307_v6, 0.0  ;;  %v2308_v9 = vmul.f32 %v2306_v5, %v2306_v5 }
0x14c0   :  { %2310 = vadd.xlane.f32.xlu0 %v2309_v7 }
0x14c1   :  { %v2312_v52 = vsel %vm83_vm1, %v2308_v9, 0.0 }
0x14c4   :  { %2313 = vadd.xlane.f32.xlu0 %v2312_v52 }
0x154d   :  { %v2311_v12 = vpop.xlane.xlu0 %2310 }
0x154e   :  { %v2315_v14 = vmul.f32 0.03125, %v2311_v12 }
0x1550   :  { %v2317_v15 = vadd.f32 1e-12, %v2315_v14 }
0x1551   :  { %v2314_v16 = vpop.xlane.xlu0 %2313 }
0x1552   :  { %3367 = vrsqrt.f32 %v2317_v15  ;;  %v2316_v17 = vmul.f32 0.03125, %v2314_v16 }
0x1554   :  { %v2318_v18 = vadd.f32 1e-12, %v2316_v17 }
0x1556   :  { %3369 = vrsqrt.f32 %v2318_v18  ;;  %v3289_v18 = vld [vmem:[%s3979_s14] sm:$0xff]  }
0x155c   :  { %v3368_v20 = vpop.eup %3367 }
0x155d   :  { %v2321_v21 = vmul.f32 %v3368_v20, %v2305_v0  ;;  %v3290_v20 = vld [vmem:[%s3979_s14 + $0x8] sm:$0xff]  }
0x155f   :  { %v2329_v62 = vmul.f32 %v2741_v22, %v2321_v21 }
0x1560   :  { %v3370_v23 = vpop.eup %3369 }
0x1561   :  { %v2322_v24 = vmul.f32 %v3370_v23, %v2306_v5  ;;  %v2337_v27 = vadd.f32 %v2742_v25, %v2329_v62 }
0x1563   :  { %v2330_v26 = vmul.f32 %v2741_v22, %v2322_v24 }
0x1565   :  { %v2338_v57 = vadd.f32 %v2742_v25, %v2330_v26 }
0x1567   :  { %v2339_v3 = vpack.c.bf16 %v2338_v57, %v2337_v27 }
0x1569   :  { %3039 = vmatmul.mubr.msk.bf16.vlgmr.msra.gmra.mrb[32].mxu1 %vm83_vm1, %v2339_v3  ;;  %v2770_v3 = vld [vmem:[%s3978_s13 + $0x1] ss:$0 sm:$0xff]  ;;  %s3381_s13 = scalar_lea.vmem %s2644_s3, 32 }
0x156a   :  { %3058 = vmatprep.mubr.msk.bf16.mxu1 %vm3406_vm0, %v3405_v1  ;;  %3055 = vmatpush3.bf16.msra.mxu1 %v3289_v18  ;;  %p3382_p0 = scmp.ne.s32.totalorder %s2644_s3, %s3381_s13  ;;  %p3387_p2 = scmp.lt.s32.totalorder %s3381_s13, %s3381_s13 }
0x156b   :  { %3056 = vmatprep.subr.bf16.mxu1 %v3405_v1 }
0x156c   :  { %p3388_p3 = por %p3387_p2, %p3386_p1 }
0x156e   :  { %3057 = vmatpush3.bf16.msra.mxu1 %v3290_v20  ;;  %p3389_p4 = pnand %p3388_p3, %p3382_p0 }
0x163c   :  { %v2402_v31 = vpop.f32.mrb[32].mxu1 }
0x163d   :  { %v2403_v33 = vadd.f32 %v2748_v60, %v2402_v31  ;;  %v3040_v34 = vpop.f32.mrb[33].mxu1 }
0x163e   :  { %v2405_v36 = vpop.f32.mrb[34].mxu1 }
0x163f   :  { %v2409_v37 = vmul.f32 %v2403_v33, %v2403_v33  ;;  %v2406_v38 = vadd.f32 %v2748_v60, %v2405_v36  ;;  %v3041_v39 = vpop.f32.mrb[35].mxu1 }
0x1641   :  { %v2411_v40 = vmul.f32 %v2409_v37, %v2403_v33  ;;  %v2410_v41 = vmul.f32 %v2406_v38, %v2406_v38  ;;  %v2771_v37 = vld [vmem:[%s3980_s15] ss:$0 sm:$0xff] }
0x1643   :  { %v2413_v42 = vmul.f32 0.044715, %v2411_v40  ;;  %v2412_v43 = vmul.f32 %v2410_v41, %v2406_v38 }
0x1645   :  { %v2415_v44 = vadd.f32 %v2413_v42, %v2403_v33  ;;  %v2414_v45 = vmul.f32 0.044715, %v2412_v43 }
0x1647   :  { %v2417_v11 = vmul.f32 0.7978846, %v2415_v44  ;;  %v2416_v13 = vadd.f32 %v2414_v45, %v2406_v38 }
0x1649   :  { %3371 = vtanh.f32 %v2417_v11  ;;  %v2418_v46 = vmul.f32 0.7978846, %v2416_v13 }
0x164b   :  { %3373 = vtanh.f32 %v2418_v46 }
0x1653   :  { %v3372_v47 = vpop.eup %3371 }
0x1654   :  { %v2421_v48 = vadd.f32 1.0, %v3372_v47 }
0x1655   :  { %v3374_v35 = vpop.eup %3373 }
0x1656   :  { %v2423_v49 = vmul.f32 0.5, %v2421_v48  ;;  %v2422_v32 = vadd.f32 1.0, %v3374_v35 }
0x1658   :  { %v2424_v50 = vmul.f32 0.5, %v2422_v32  ;;  %v2425_v8 = vmul.f32 %v2423_v49, %v2403_v33 }
0x165a   :  { %v2426_v51 = vmul.f32 %v2424_v50, %v2406_v38 }
0x165c   :  { %v2427_v54 = vpack.c.bf16 %v2426_v51, %v2425_v8 }
0x165e   :  { %3051 = vmatmul.mubr.msk.bf16.vlgmr.msra.gmra.mrb[28].mxu0 %vm1216_vm6, %v2427_v54 }
0x1731   :  { %v2506_v19 = vpop.f32.mrb[28].mxu0 }
0x1732   :  { %v2507_v56 = vadd.f32 %v2761_v55, %v2506_v19  ;;  %v3052_v58 = vpop.f32.mrb[29].mxu0 }
0x1733   :  { %v2509_v59 = vpop.f32.mrb[30].mxu0 }
0x1734   :  { %v2510_v61 = vadd.f32 %v2761_v55, %v2509_v59  ;;  %v3053_v63 = vpop.f32.mrb[31].mxu0  ;;  %v2513_v0 = vadd.f32 %v2507_v56, %v2337_v27  ;;  %v2769_v27 = vld [vmem:[%s3977_s12 + $0x1] ss:$0 sm:$0xff] }
0x1736   :  { %v2519_v2 = vsel %vm83_vm1, %v2513_v0, 0.0  ;;  %v2514_v5 = vadd.f32 %v2510_v61, %v2338_v57 }
0x1737   :  { %2520 = vadd.xlane.f32.xlu1 %v2519_v2 }
0x1738   :  { %v2522_v6 = vsel %vm83_vm1, %v2514_v5, 0.0 }
0x1739   :  { %2523 = vadd.xlane.f32.xlu0 %v2522_v6 }
0x17c4   :  { %v2521_v7 = vpop.xlane.xlu1 %2520 }
0x17c5   :  { %v2525_v9 = vmul.f32 0.03125, %v2521_v7 }
0x17c6   :  { %v2524_v52 = vpop.xlane.xlu0 %2523 }
0x17c7   :  { %v2527_v53 = vsub.f32 %v2513_v0, %v2525_v9  ;;  %v2526_v10 = vmul.f32 0.03125, %v2524_v52 }
0x17c9   :  { %v2528_v12 = vsub.f32 %v2514_v5, %v2526_v10  ;;  %v2529_v14 = vmul.f32 %v2527_v53, %v2527_v53 }
0x17cb   :  { %v2531_v15 = vsel %vm83_vm1, %v2529_v14, 0.0  ;;  %v2530_v16 = vmul.f32 %v2528_v12, %v2528_v12 }
0x17cc   :  { %2532 = vadd.xlane.f32.xlu1 %v2531_v15 }
0x17cd   :  { %v2534_v17 = vsel %vm83_vm1, %v2530_v16, 0.0 }
0x17ce   :  { %2535 = vadd.xlane.f32.xlu0 %v2534_v17 }
0x1859   :  { %v2533_v21 = vpop.xlane.xlu1 %2532 }
0x185a   :  { %v2537_v22 = vmul.f32 0.03125, %v2533_v21 }
0x185b   :  { %v2536_v23 = vpop.xlane.xlu0 %2535 }
0x185c   :  { %v2539_v62 = vadd.f32 1e-12, %v2537_v22  ;;  %v2538_v24 = vmul.f32 0.03125, %v2536_v23 }
0x185e   :  { %3375 = vrsqrt.f32 %v2539_v62  ;;  %v2540_v25 = vadd.f32 1e-12, %v2538_v24 }
0x1860   :  { %3377 = vrsqrt.f32 %v2540_v25 }
0x1868   :  { %v3376_v26 = vpop.eup %3375 }
0x1869   :  { %v2543_v57 = vmul.f32 %v3376_v26, %v2527_v53 }
0x186a   :  { %v3378_v1 = vpop.eup %3377 }
0x186b   :  { %v2551_v4 = vmul.f32 %v2769_v27, %v2543_v57  ;;  %v2544_v28 = vmul.f32 %v3378_v1, %v2528_v12 }
0x186d   :  { %v2559_v29 = vadd.f32 %v2770_v3, %v2551_v4  ;;  %v2552_v30 = vmul.f32 %v2769_v27, %v2544_v28 }
0x186f   :  { %v2560_v60 = vadd.f32 %v2770_v3, %v2552_v30  ;;  %v2562_v31 = vrot.slane %v2559_v29, 7 }
0x1871   :  { %v2565_v33 = vrot.slane %v2560_v60, 6 }
0x1873   :  { %v2568_v34 = vsel %vm2567_vm7, %v2562_v31, %v2565_v33 }
0x1874   :  { %v2569_v36 = vpack.c.bf16 %v2568_v34, %v2568_v34 }
0x1876   :  { %3059 = vmatmul.mubr.msk.bf16.vlgmr.msra.gmra.mrb[36].mxu1 %vm83_vm1, %v2569_v36 }
0x1949   :  { %v2630_v38 = vpop.f32.mrb[36].mxu1 }
0x194a   :  { %v2631_v39 = vadd.f32 %v2771_v37, %v2630_v38  ;;  %v3060_v40 = vpop.f32.mrb[37].mxu1 }
0x194b   :  { %v2633_v41 = vpop.f32.mrb[38].mxu1 }
0x194c   :  { %2636 = vst [vmem:[#allocation2] sm:$0x3] %v2631_v39  ;;  %v3061_v42 = vpop.f32.mrb[39].mxu1 }
0x194d   :  { %3392 = shalt.err (!%p3389_p4)
}
0x194e   :  { %s3393_s15 = scalar_lea.hbm %s3981_s16, 32 }
0x194f   :  { %p3394_p5 = scmp.ne.s32.totalorder %s3981_s16, %s3393_s15  ;;  %p3397_p6 = scmp.lt.u32.totalorder %s3393_s15, %s3981_s16 }
0x1951   :  { %p3399_p7 = pnand %p3397_p6, %p3394_p5 }
0x1953   :  { %3402 = shalt.err (!%p3399_p7)
}
0x1954   :  { %2646 = dma.vmem_to_hbm [thread:$0]  %s2644_s3, 32, %s3981_s16, [#allocation3]  }
0x1955   :  { %3403 = dma.done.wait [#allocation3], 32  }
0x1956   :  { %3404 = vsyncadd [#allocation3], 4294967264 }
0x1957   :  { %2650 = vsyncpa [#allocation3], 1 }

</bundles_post_ra>
